<compile_context>
chip_gen: v7x
topology: tpu7x:2x2x1
jax: 0.10.0
libtpu: 0.0.40
codegen_flags: <defaults>
</compile_context>

<pallas_src>
from functools import partial

import numpy as np
import jax
import jax.numpy as jnp
from jax.experimental import pallas as pl
from jax.experimental.pallas import tpu as pltpu

_LANE = 128


def _round_up(n, m):
    return ((n + m - 1) // m) * m


# ----------------------------------------------------------------------------
# Pallas kernel: edge_trans MLP with residual
# ----------------------------------------------------------------------------

def _mlp2_res_kernel(x_ref, w1_ref, b1_ref, w2_ref, b2_ref, o_ref):
    """y = x + Linear2(ReLU(Linear1(x)))  (edge_trans with its residual)."""
    x = x_ref[...]                                   # f32 (kept for the residual)
    x_b = x.astype(jnp.bfloat16)
    h = jnp.dot(x_b, w1_ref[...].astype(jnp.bfloat16),
                preferred_element_type=jnp.float32) + b1_ref[...]
    h = jnp.maximum(h, 0.0)
    y = jnp.dot(h.astype(jnp.bfloat16), w2_ref[...].astype(jnp.bfloat16),
                preferred_element_type=jnp.float32) + b2_ref[...]
    o_ref[...] = (y + x).astype(o_ref.dtype)


def pallas_mlp2_res(x, w1, b1, w2, b2):
    M, Din = x.shape
    _, H = w1.shape
    _, Dout = w2.shape
    assert Dout == Din  # residual add requires matching dims
    return pl.pallas_call(
        _mlp2_res_kernel,
        out_shape=jax.ShapeDtypeStruct((M, Dout), jnp.float32),
        grid=(1,),
        in_specs=[pl.BlockSpec((M, Din), lambda i: (0, 0)),
                  pl.BlockSpec((Din, H), lambda i: (0, 0)),
                  pl.BlockSpec((1, H), lambda i: (0, 0)),
                  pl.BlockSpec((H, Dout), lambda i: (0, 0)),
                  pl.BlockSpec((1, Dout), lambda i: (0, 0))],
        out_specs=pl.BlockSpec((M, Dout), lambda i: (0, 0)),
        compiler_params=pltpu.CompilerParams(dimension_semantics=("arbitrary",)),
    )(x, w1, b1, w2, b2)


# ----------------------------------------------------------------------------
# Pallas kernel: fully fused multi-layer WrappedMultiConv (ChebConv) stack
# ----------------------------------------------------------------------------

def _make_fused_gnn_kernel(num_convs, K):
    """One grid step == one GNN layer.

    Per layer:  out = [T_{0,0}|T_{0,1}|...|T_{nc-1,K-1}] @ W_layer + b_layer
    with T_{c,0} = x, T_{c,1} = L_c x, T_{c,k} = 2 L_c T_{c,k-1} - T_{c,k-2}.
    ReLU between layers (not after the last).  L stays VMEM-resident across
    all layers; the activation is carried in a bf16 VMEM scratch.
    """
    def kernel(x_ref, l_ref, w_ref, b_ref, o_ref, act_ref, tcat_ref):
        layer = pl.program_id(0)

        @pl.when(layer == 0)
        def _():
            act_ref[...] = x_ref[...]

        x_bf = act_ref[...]                          # (Np, Dp) bf16
        Np, Dp = x_bf.shape

        if K > 1:
            # both branches' first hop in one (num_convs*Np, Np)x(Np, Dp) matmul
            l_flat = l_ref[...].reshape(num_convs * Np, Np)
            t1_all_f = jnp.dot(l_flat, x_bf, preferred_element_type=jnp.float32)
            t1_all_b = t1_all_f.astype(jnp.bfloat16)

        x_f = x_bf.astype(jnp.float32)
        for c in range(num_convs):                   # static unroll (2)
            base = c * K * Dp
            tcat_ref[:, base:base + Dp] = x_bf       # T_{c,0}
            if K > 1:
                t0_f = x_f
                t1_f = t1_all_f[c * Np:(c + 1) * Np]
                t1_b = t1_all_b[c * Np:(c + 1) * Np]
                tcat_ref[:, base + Dp:base + 2 * Dp] = t1_b
                for k in range(2, K):                # static unroll
                    t2_f = 2.0 * jnp.dot(l_ref[c], t1_b,
                                         preferred_element_type=jnp.float32) - t0_f
                    t2_b = t2_f.astype(jnp.bfloat16)
                    tcat_ref[:, base + k * Dp:base + (k + 1) * Dp] = t2_b
                    t0_f, t1_f, t1_b = t1_f, t2_f, t2_b

        # single deep (num_convs*K*Dp)-contraction matmul over all branches/hops
        out = jnp.dot(tcat_ref[...], w_ref[0],
                      preferred_element_type=jnp.float32) + b_ref[0]

        # carried activation for the next layer (ReLU between layers)
        act_ref[...] = jnp.maximum(out, 0.0).astype(act_ref.dtype)

        @pl.when(layer == pl.num_programs(0) - 1)
        def _():
            o_ref[...] = out.astype(o_ref.dtype)     # last layer: no ReLU

    return kernel


def pallas_multiconv_gnn(x, L, W_all, b_all, *, K, num_convs):
    Np, Dp = x.shape
    n_layers = W_all.shape[0]
    nckD = num_convs * K * Dp
    assert L.shape == (num_convs, Np, Np)
    assert W_all.shape == (n_layers, nckD, Dp)
    assert b_all.shape == (n_layers, 1, Dp)

    kernel = _make_fused_gnn_kernel(num_convs, K)

    # Rough VMEM budget: raise the scoped limit only when the resident L stack
    # outgrows the default (large graphs); leave headroom under physical VMEM.
    est = (num_convs * Np * Np * 2          # resident L (bf16)
           + 2 * Np * Dp * 2                # x (possibly double-buffered)
           + 2 * (nckD * Dp * 2 + Dp * 4)   # per-layer W/b, double-buffered
           + Np * Dp * 2                    # act scratch
           + Np * nckD * 2                  # packed T slab
           + 6 * Np * Dp * 4)               # f32 temporaries headroom
    extra = {}
    if est > 16 * 1024 * 1024:
        extra["vmem_limit_bytes"] = int(min(est * 1.5, 100 * 1024 * 1024))

    return pl.pallas_call(
        kernel,
        out_shape=jax.ShapeDtypeStruct((Np, Dp), jnp.float32),
        grid=(n_layers,),
        in_specs=[pl.BlockSpec((Np, Dp), lambda l: (0, 0)),                 # x: resident
                  pl.BlockSpec((num_convs, Np, Np), lambda l: (0, 0, 0)),   # L: resident
                  pl.BlockSpec((1, nckD, Dp), lambda l: (l, 0, 0)),         # W: per layer
                  pl.BlockSpec((1, 1, Dp), lambda l: (l, 0, 0))],           # b: per layer
        out_specs=pl.BlockSpec((Np, Dp), lambda l: (0, 0)),
        scratch_shapes=[pltpu.VMEM((Np, Dp), jnp.bfloat16),     # carried activation
                        pltpu.VMEM((Np, nckD), jnp.bfloat16)],  # packed [T0..T_{K-1}] slab
        compiler_params=pltpu.CompilerParams(
            dimension_semantics=("arbitrary",), **extra),
    )(x, L, W_all, b_all)


# ----------------------------------------------------------------------------
# Parameters (mirrors MultiConvNet / WrappedMultiConv / ChebConv shapes),
# pre-packed into the collapsed (num_convs*K*Dp, Dp) layout at init time.
# ----------------------------------------------------------------------------

def init_params(key, nfeature_dim, hidden_dim, output_dim, n_gnn_layers, K,
                num_convs=2, efeat_dim=2):
    rup = lambda n: _round_up(n, _LANE)
    k_et, k_convs = jax.random.split(key)

    # edge_trans: Linear(efeat, hidden) -> ReLU -> Linear(hidden, efeat)
    ka, kb, kc, kd = jax.random.split(k_et, 4)
    b1v = 1.0 / np.sqrt(efeat_dim)
    b2v = 1.0 / np.sqrt(hidden_dim)
    w1 = jax.random.uniform(ka, (efeat_dim, hidden_dim), jnp.float32, -b1v, b1v)
    b1 = jax.random.uniform(kb, (hidden_dim,), jnp.float32, -b1v, b1v)
    w2 = jax.random.uniform(kc, (hidden_dim, efeat_dim), jnp.float32, -b2v, b2v)
    b2 = jax.random.uniform(kd, (efeat_dim,), jnp.float32, -b2v, b2v)
    Fp, Hp = rup(efeat_dim), rup(hidden_dim)
    edge_trans = (
        jnp.zeros((Fp, Hp), jnp.float32).at[:efeat_dim, :hidden_dim].set(w1),
        jnp.zeros((1, Hp), jnp.float32).at[0, :hidden_dim].set(b1),
        jnp.zeros((Hp, Fp), jnp.float32).at[:hidden_dim, :efeat_dim].set(w2),
        jnp.zeros((1, Fp), jnp.float32).at[0, :efeat_dim].set(b2),
    )

    # conv layer dims, exactly as MultiConvNet.__init__ builds them
    dims = []
    if n_gnn_layers == 1:
        dims.append((nfeature_dim, output_dim))
    else:
        dims.append((nfeature_dim, hidden_dim))
    for _ in range(n_gnn_layers - 2):
        dims.append((hidden_dim, hidden_dim))
    dims.append((hidden_dim, output_dim))

    # one common padded feature dim so every layer shares the same block shape
    Dp = rup(max(nfeature_dim, hidden_dim, output_dim))
    n_layers = len(dims)
    nckD = num_convs * K * Dp

    W_all = jnp.zeros((n_layers, nckD, Dp), jnp.float32)
    b_all = jnp.zeros((n_layers, 1, Dp), jnp.float32)

    layer_keys = jax.random.split(k_convs, n_layers)
    for li, ((din, dout), lk) in enumerate(zip(dims, layer_keys)):
        wkeys = jax.random.split(lk, num_convs * (K + 1))
        glorot = float(np.sqrt(6.0 / (din + dout)))
        bbound = 1.0 / np.sqrt(din)
        bsum = jnp.zeros((dout,), jnp.float32)
        idx = 0
        for c in range(num_convs):
            for k in range(K):
                w = jax.random.uniform(wkeys[idx], (din, dout), jnp.float32,
                                       -glorot, glorot)
                idx += 1
                r0 = (c * K + k) * Dp
                W_all = W_all.at[li, r0:r0 + din, :dout].set(w)
            # one bias per ChebConv; the branches are summed, so pre-sum them
            bsum = bsum + jax.random.uniform(wkeys[idx], (dout,), jnp.float32,
                                             -bbound, bbound)
            idx += 1
        b_all = b_all.at[li, 0, :dout].set(bsum)

    return {"edge_trans": edge_trans,
            "conv_w": W_all.astype(jnp.bfloat16),
            "conv_b": b_all}


# ----------------------------------------------------------------------------
# Host-side graph surgery (data-dependent shapes -> NumPy, outside jit)
# ----------------------------------------------------------------------------

def undirect_graph_host(edge_index, edge_attr):
    ei = np.asarray(edge_index)
    ea = np.asarray(edge_attr)
    # is_directed: reverse of the first edge is absent
    candidates = ei[1, ei[0, :] == ei[1, 0]]
    if ei[0, 0] not in candidates:
        ei = np.concatenate([ei, np.stack([ei[1], ei[0]], axis=0)], axis=1)
        ea = np.concatenate([ea, ea], axis=0)
    return ei, ea


def remove_self_loops_host(edge_index, edge_attr):
    m = edge_index[0] != edge_index[1]
    return edge_index[:, m], edge_attr[m]


# ----------------------------------------------------------------------------
# Scaled Chebyshev Laplacians (dense), one per edge-feature channel.
# Matches PyG ChebConv.__norm__ with normalization=None:
#   L = D - A;  lambda_max = 2*max(lap edge weights);  L_hat = 2L/lambda_max - I
# (the `== inf` mask matches PyG's masked_fill_ exactly)
# ----------------------------------------------------------------------------

def scaled_laplacians(edge_index, edge_weights, num_nodes):
    row, col = edge_index[0], edge_index[1]
    num_channels = edge_weights.shape[1]
    e = row.shape[0]
    diag_idx = jnp.arange(num_nodes)
    ls = []
    for c in range(num_channels):
        w = edge_weights[:, c]
        deg = jnp.zeros((num_nodes,), jnp.float32).at[row].add(w)
        lap_w = jnp.concatenate([-w, deg], axis=0)
        lambda_max = 2.0 * jnp.max(lap_w)
        scaled = 2.0 * lap_w / lambda_max
        scaled = jnp.where(scaled == jnp.inf, 0.0, scaled)
        off = scaled[:e]
        dia = scaled[e:] - 1.0                      # self-loop entries minus 1
        L = jnp.zeros((num_nodes, num_nodes), jnp.float32)
        L = L.at[col, row].add(off)                 # message: source row -> target col
        L = L.at[diag_idx, diag_idx].add(dia)
        ls.append(L)
    return jnp.stack(ls, axis=0)


# ----------------------------------------------------------------------------
# Forward pass
# ----------------------------------------------------------------------------

@partial(jax.jit, static_argnames=("nfeature_dim", "output_dim", "K", "num_convs"))
def _forward_core(params, x_raw, edge_index, edge_attr, *,
                  nfeature_dim, output_dim, K, num_convs):
    N = x_raw.shape[0]
    E = edge_index.shape[1]
    x = x_raw[:, 4:4 + nfeature_dim]

    # --- edge feature transform: ef + edge_trans(ef), fused Pallas MLP ---
    w1p, b1p, w2p, b2p = params["edge_trans"]
    Fp = w1p.shape[0]
    Ep = _round_up(E, 8)
    ef_pad = jnp.zeros((Ep, Fp), jnp.float32).at[:E, :num_convs].set(
        edge_attr[:, :num_convs])
    ef_out = pallas_mlp2_res(ef_pad, w1p, b1p, w2p, b2p)[:E, :num_convs]

    # --- dense scaled Laplacians, padded lane-dense, bf16 for the MXU ---
    Np = _round_up(N, _LANE)
    L = scaled_laplacians(edge_index, ef_out, N)
    Lp = jnp.zeros((num_convs, Np, Np), jnp.bfloat16).at[:, :N, :N].set(
        L.astype(jnp.bfloat16))

    # --- node features, padded lane-dense ---
    W_all = params["conv_w"]                 # (n_layers, num_convs*K*Dp, Dp) bf16
    b_all = params["conv_b"]                 # (n_layers, 1, Dp) f32
    Dp = W_all.shape[-1]
    xp = jnp.zeros((Np, Dp), jnp.bfloat16).at[:N, :nfeature_dim].set(
        x.astype(jnp.bfloat16))

    # --- all GNN layers in one fused Pallas kernel (L resident across layers) ---
    # TODO(synk): nn.Dropout in the torch forward is a freshly-built training-mode
    # module whose RNG cannot be reproduced; treated as identity (demo rate = 0.0).
    out = pallas_multiconv_gnn(xp, Lp, W_all, b_all, K=K, num_convs=num_convs)
    return out[:N, :output_dim]


def multiconvnet_forward(params, x_raw, edge_index, edge_attr, *,
                         nfeature_dim, output_dim, K, num_convs=2):
    assert x_raw.shape[-1] == nfeature_dim * 2 + 4
    # data-dependent graph fix-up (matches undirect_graph + ChebConv's
    # remove_self_loops) stays on the host so the rest can be jitted.
    ei_np, ea_np = undirect_graph_host(edge_index, edge_attr)
    ei_np, ea_np = remove_self_loops_host(ei_np, ea_np)
    return _forward_core(params, x_raw,
                         jnp.asarray(ei_np, jnp.int32),
                         jnp.asarray(ea_np, jnp.float32),
                         nfeature_dim=nfeature_dim, output_dim=output_dim,
                         K=K, num_convs=num_convs)


# ----------------------------------------------------------------------------
# Demo
# ----------------------------------------------------------------------------

if __name__ == "__main__":
    nfeature_dim = 4
    efeature_dim = 5            # module asserts == 5; only the first 2 cols are used
    output_dim = 8
    hidden_dim = 32
    n_gnn_layers = 3
    K = 3
    dropout_rate = 0.0

    assert efeature_dim == 5
    num_convs = efeature_dim - 3        # == 2, as in MultiConvNet.__init__

    num_nodes = 16
    num_edges = 24

    key = jax.random.PRNGKey(0)
    k_param, k_x, k_src, k_dst, k_ea = jax.random.split(key, 5)

    params = init_params(k_param, nfeature_dim, hidden_dim, output_dim,
                         n_gnn_layers, K, num_convs=num_convs,
                         efeat_dim=num_convs)

    # data.x: (num_nodes, nfeature_dim * 2 + 4)
    x_raw = jax.random.normal(k_x, (num_nodes, nfeature_dim * 2 + 4), jnp.float32)
    src = jax.random.randint(k_src, (num_edges,), 0, num_nodes, jnp.int32)
    dst = jax.random.randint(k_dst, (num_edges,), 0, num_nodes, jnp.int32)
    edge_index = jnp.stack([src, dst], axis=0)                 # (2, num_edges)
    edge_attr = jax.random.normal(k_ea, (num_edges, efeature_dim), jnp.float32)

    out = multiconvnet_forward(params, x_raw, edge_index, edge_attr,
                               nfeature_dim=nfeature_dim, output_dim=output_dim,
                               K=K, num_convs=num_convs)
    out = jax.block_until_ready(out)
    assert out.shape == (num_nodes, output_dim)
    print("KERNEL_OK")
</pallas_src>

<mosaic_0001>
module attributes {stable_mosaic.version = 11 : i64} {
  func.func private @main(%arg0: i32) attributes {dimension_semantics = [#tpu.dimension_semantics<core_parallel>], iteration_bounds = array<i64: 2>, tpu.core_type = #tpu.core_type<sc_scalar_subcore>, window_params = []} {
    return
  }
}

module attributes {stable_mosaic.version = 11 : i64} {
  func.func private @main(%arg0: i32) attributes {dimension_semantics = [#tpu.dimension_semantics<core_parallel>], iteration_bounds = array<i64: 2>, tpu.core_type = #tpu.core_type<sc_scalar_subcore>, window_params = []} {
    return
  }
}

module attributes {stable_mosaic.version = 11 : i64} {
  func.func @_mlp2_res_kernel(%arg0: i32, %arg1: memref<48x128xf32, #tpu.memory_space<vmem>>, %arg2: memref<128x128xf32, #tpu.memory_space<vmem>>, %arg3: memref<1x128xf32, #tpu.memory_space<vmem>>, %arg4: memref<128x128xf32, #tpu.memory_space<vmem>>, %arg5: memref<1x128xf32, #tpu.memory_space<vmem>>, %arg6: memref<48x128xf32, #tpu.memory_space<vmem>>) attributes {dimension_semantics = [#tpu.dimension_semantics<arbitrary>], iteration_bounds = array<i64: 1>, scalar_prefetch = 0 : i64, scratch_operands = 0 : i64, tpu.core_type = #tpu.core_type<tc>, window_params = [{pipeline_mode = #tpu.pipeline_mode<synchronous>, transform_indices = @transform_0, window_bounds = array<i64: 48, 128>}, {pipeline_mode = #tpu.pipeline_mode<synchronous>, transform_indices = @transform_1, window_bounds = array<i64: 128, 128>}, {pipeline_mode = #tpu.pipeline_mode<synchronous>, transform_indices = @transform_2, window_bounds = array<i64: 1, 128>}, {pipeline_mode = #tpu.pipeline_mode<synchronous>, transform_indices = @transform_3, window_bounds = array<i64: 128, 128>}, {pipeline_mode = #tpu.pipeline_mode<synchronous>, transform_indices = @transform_4, window_bounds = array<i64: 1, 128>}, {pipeline_mode = #tpu.pipeline_mode<synchronous>, transform_indices = @transform_5, window_bounds = array<i64: 48, 128>}]} {
    %c0 = arith.constant 0 : index
    %c0_0 = arith.constant 0 : index
    %0 = vector.load %arg1[%c0, %c0_0] : memref<48x128xf32, #tpu.memory_space<vmem>>, vector<48x128xf32>
    %1 = arith.truncf %0 : vector<48x128xf32> to vector<48x128xbf16>
    %c0_1 = arith.constant 0 : index
    %c0_2 = arith.constant 0 : index
    %2 = vector.load %arg2[%c0_1, %c0_2] : memref<128x128xf32, #tpu.memory_space<vmem>>, vector<128x128xf32>
    %3 = arith.truncf %2 : vector<128x128xf32> to vector<128x128xbf16>
    %cst = arith.constant dense<0.000000e+00> : vector<48x128xf32>
    %4 = tpu.matmul %1, %3, %cst {dimension_numbers = #tpu.dot_dimension_numbers<[1], [0], [0], [1], [0, 0, 1, 1], [], []>} : vector<48x128xbf16>, vector<128x128xbf16>, vector<48x128xf32> -> vector<48x128xf32>
    %c0_3 = arith.constant 0 : index
    %c0_4 = arith.constant 0 : index
    %5 = vector.load %arg3[%c0_3, %c0_4] : memref<1x128xf32, #tpu.memory_space<vmem>>, vector<1x128xf32>
    %6 = vector.broadcast %5 : vector<1x128xf32> to vector<48x128xf32>
    %7 = arith.addf %4, %6 : vector<48x128xf32>
    %cst_5 = arith.constant 0.000000e+00 : f32
    %8 = vector.broadcast %cst_5 : f32 to vector<48x128xf32>
    %9 = arith.maximumf %7, %8 : vector<48x128xf32>
    %10 = arith.truncf %9 : vector<48x128xf32> to vector<48x128xbf16>
    %c0_6 = arith.constant 0 : index
    %c0_7 = arith.constant 0 : index
    %11 = vector.load %arg4[%c0_6, %c0_7] : memref<128x128xf32, #tpu.memory_space<vmem>>, vector<128x128xf32>
    %12 = arith.truncf %11 : vector<128x128xf32> to vector<128x128xbf16>
    %cst_8 = arith.constant dense<0.000000e+00> : vector<48x128xf32>
    %13 = tpu.matmul %10, %12, %cst_8 {dimension_numbers = #tpu.dot_dimension_numbers<[1], [0], [0], [1], [0, 0, 1, 1], [], []>} : vector<48x128xbf16>, vector<128x128xbf16>, vector<48x128xf32> -> vector<48x128xf32>
    %c0_9 = arith.constant 0 : index
    %c0_10 = arith.constant 0 : index
    %14 = vector.load %arg5[%c0_9, %c0_10] : memref<1x128xf32, #tpu.memory_space<vmem>>, vector<1x128xf32>
    %15 = vector.broadcast %14 : vector<1x128xf32> to vector<48x128xf32>
    %16 = arith.addf %13, %15 : vector<48x128xf32>
    %17 = arith.addf %16, %0 : vector<48x128xf32>
    %c0_11 = arith.constant 0 : index
    %c0_12 = arith.constant 0 : index
    %18 = vector.load %arg6[%c0_11, %c0_12] : memref<48x128xf32, #tpu.memory_space<vmem>>, vector<48x128xf32>
    tpu.vector_store %arg6[%c0_11, %c0_12], %17 {strides = array<i32>} : memref<48x128xf32, #tpu.memory_space<vmem>>, vector<48x128xf32>,
    return
  }
  func.func @transform_0(%arg0: i32) -> (i32, i32) {
    %c0_i32 = arith.constant 0 : i32
    %c0_i32_0 = arith.constant 0 : i32
    %c0_i32_1 = arith.constant 0 : i32
    return %c0_i32, %c0_i32_0 : i32, i32
  }
  func.func @transform_1(%arg0: i32) -> (i32, i32) {
    %c0_i32 = arith.constant 0 : i32
    %c0_i32_0 = arith.constant 0 : i32
    %c0_i32_1 = arith.constant 0 : i32
    return %c0_i32, %c0_i32_0 : i32, i32
  }
  func.func @transform_2(%arg0: i32) -> (i32, i32) {
    %c0_i32 = arith.constant 0 : i32
    %c0_i32_0 = arith.constant 0 : i32
    %c0_i32_1 = arith.constant 0 : i32
    return %c0_i32, %c0_i32_0 : i32, i32
  }
  func.func @transform_3(%arg0: i32) -> (i32, i32) {
    %c0_i32 = arith.constant 0 : i32
    %c0_i32_0 = arith.constant 0 : i32
    %c0_i32_1 = arith.constant 0 : i32
    return %c0_i32, %c0_i32_0 : i32, i32
  }
  func.func @transform_4(%arg0: i32) -> (i32, i32) {
    %c0_i32 = arith.constant 0 : i32
    %c0_i32_0 = arith.constant 0 : i32
    %c0_i32_1 = arith.constant 0 : i32
    return %c0_i32, %c0_i32_0 : i32, i32
  }
  func.func @transform_5(%arg0: i32) -> (i32, i32) {
    %c0_i32 = arith.constant 0 : i32
    %c0_i32_0 = arith.constant 0 : i32
    %c0_i32_1 = arith.constant 0 : i32
    return %c0_i32, %c0_i32_0 : i32, i32
  }
}

module attributes {stable_mosaic.version = 11 : i64} {
  func.func @kernel(%arg0: i32, %arg1: memref<128x128xbf16, #tpu.memory_space<vmem>>, %arg2: memref<2x128x128xbf16, #tpu.memory_space<vmem>>, %arg3: memref<1x768x128xbf16, #tpu.memory_space<vmem>>, %arg4: memref<1x1x128xf32, #tpu.memory_space<vmem>>, %arg5: memref<128x128xf32, #tpu.memory_space<vmem>>, %arg6: memref<128x128xbf16, #tpu.memory_space<vmem>>, %arg7: memref<128x768xbf16, #tpu.memory_space<vmem>>) attributes {dimension_semantics = [#tpu.dimension_semantics<arbitrary>], iteration_bounds = array<i64: 3>, scalar_prefetch = 0 : i64, scratch_operands = 2 : i64, tpu.core_type = #tpu.core_type<tc>, window_params = [{pipeline_mode = #tpu.pipeline_mode<synchronous>, transform_indices = @transform_0, window_bounds = array<i64: 128, 128>}, {pipeline_mode = #tpu.pipeline_mode<synchronous>, transform_indices = @transform_1, window_bounds = array<i64: 2, 128, 128>}, {transform_indices = @transform_2, window_bounds = array<i64: 1, 768, 128>}, {transform_indices = @transform_3, window_bounds = array<i64: 1, 1, 128>}, {pipeline_mode = #tpu.pipeline_mode<synchronous>, transform_indices = @transform_4, window_bounds = array<i64: 128, 128>}]} {
    %c0_i32 = arith.constant 0 : i32
    %0 = arith.cmpi eq, %arg0, %c0_i32 : i32
    %1 = arith.extui %0 : i1 to i32
    %c0_i32_0 = arith.constant 0 : i32
    %2 = arith.cmpi ne, %1, %c0_i32_0 : i32
    scf.if %2 {
      %c0_34 = arith.constant 0 : index
      %c0_35 = arith.constant 0 : index
      %46 = vector.load %arg1[%c0_34, %c0_35] : memref<128x128xbf16, #tpu.memory_space<vmem>>, vector<128x128xbf16>
      %c0_36 = arith.constant 0 : index
      %c0_37 = arith.constant 0 : index
      %47 = vector.load %arg6[%c0_36, %c0_37] : memref<128x128xbf16, #tpu.memory_space<vmem>>, vector<128x128xbf16>
      tpu.vector_store %arg6[%c0_36, %c0_37], %46 {strides = array<i32>} : memref<128x128xbf16, #tpu.memory_space<vmem>>, vector<128x128xbf16>,
    } else {
    }
    %c0 = arith.constant 0 : index
    %c0_1 = arith.constant 0 : index
    %3 = vector.load %arg6[%c0, %c0_1] : memref<128x128xbf16, #tpu.memory_space<vmem>>, vector<128x128xbf16>
    %c0_2 = arith.constant 0 : index
    %c0_3 = arith.constant 0 : index
    %c0_4 = arith.constant 0 : index
    %4 = vector.load %arg2[%c0_2, %c0_3, %c0_4] : memref<2x128x128xbf16, #tpu.memory_space<vmem>>, vector<2x128x128xbf16>
    %5 = vector.shape_cast %4 : vector<2x128x128xbf16> to vector<256x128xbf16>
    %cst = arith.constant dense<0.000000e+00> : vector<256x128xf32>
    %6 = tpu.matmul %5, %3, %cst {dimension_numbers = #tpu.dot_dimension_numbers<[1], [0], [0], [1], [0, 0, 1, 1], [], []>} : vector<256x128xbf16>, vector<128x128xbf16>, vector<256x128xf32> -> vector<256x128xf32>
    %7 = arith.truncf %6 : vector<256x128xf32> to vector<256x128xbf16>
    %8 = arith.extf %3 : vector<128x128xbf16> to vector<128x128xf32>
    %c0_5 = arith.constant 0 : index
    %c0_6 = arith.constant 0 : index
    %9 = vector.load %arg7[%c0_5, %c0_6] : memref<128x768xbf16, #tpu.memory_space<vmem>>, vector<128x128xbf16>
    tpu.vector_store %arg7[%c0_5, %c0_6], %3 {strides = array<i32>} : memref<128x768xbf16, #tpu.memory_space<vmem>>, vector<128x128xbf16>,
    %10 = vector.extract_strided_slice %7 {offsets = [0, 0], sizes = [128, 128], strides = [1, 1]} : vector<256x128xbf16> to vector<128x128xbf16>
    %c0_7 = arith.constant 0 : index
    %c128 = arith.constant 128 : index
    %11 = vector.load %arg7[%c0_7, %c128] : memref<128x768xbf16, #tpu.memory_space<vmem>>, vector<128x128xbf16>
    tpu.vector_store %arg7[%c0_7, %c128], %10 {strides = array<i32>} : memref<128x768xbf16, #tpu.memory_space<vmem>>, vector<128x128xbf16>,
    %c0_8 = arith.constant 0 : index
    %c0_9 = arith.constant 0 : index
    %c0_10 = arith.constant 0 : index
    %12 = vector.load %arg2[%c0_8, %c0_9, %c0_10] : memref<2x128x128xbf16, #tpu.memory_space<vmem>>, vector<1x128x128xbf16>
    %13 = vector.shape_cast %12 : vector<1x128x128xbf16> to vector<128x128xbf16>
    %cst_11 = arith.constant dense<0.000000e+00> : vector<128x128xf32>
    %14 = tpu.matmul %13, %10, %cst_11 {dimension_numbers = #tpu.dot_dimension_numbers<[1], [0], [0], [1], [0, 0, 1, 1], [], []>} : vector<128x128xbf16>, vector<128x128xbf16>, vector<128x128xf32> -> vector<128x128xf32>
    %cst_12 = arith.constant 2.000000e+00 : f32
    %15 = vector.broadcast %cst_12 : f32 to vector<128x128xf32>
    %16 = arith.mulf %15, %14 : vector<128x128xf32>
    %17 = arith.subf %16, %8 : vector<128x128xf32>
    %18 = arith.truncf %17 : vector<128x128xf32> to vector<128x128xbf16>
    %c0_13 = arith.constant 0 : index
    %c256 = arith.constant 256 : index
    %19 = vector.load %arg7[%c0_13, %c256] : memref<128x768xbf16, #tpu.memory_space<vmem>>, vector<128x128xbf16>
    tpu.vector_store %arg7[%c0_13, %c256], %18 {strides = array<i32>} : memref<128x768xbf16, #tpu.memory_space<vmem>>, vector<128x128xbf16>,
    %c0_14 = arith.constant 0 : index
    %c384 = arith.constant 384 : index
    %20 = vector.load %arg7[%c0_14, %c384] : memref<128x768xbf16, #tpu.memory_space<vmem>>, vector<128x128xbf16>
    tpu.vector_store %arg7[%c0_14, %c384], %3 {strides = array<i32>} : memref<128x768xbf16, #tpu.memory_space<vmem>>, vector<128x128xbf16>,
    %21 = vector.extract_strided_slice %7 {offsets = [128, 0], sizes = [128, 128], strides = [1, 1]} : vector<256x128xbf16> to vector<128x128xbf16>
    %c0_15 = arith.constant 0 : index
    %c512 = arith.constant 512 : index
    %22 = vector.load %arg7[%c0_15, %c512] : memref<128x768xbf16, #tpu.memory_space<vmem>>, vector<128x128xbf16>
    tpu.vector_store %arg7[%c0_15, %c512], %21 {strides = array<i32>} : memref<128x768xbf16, #tpu.memory_space<vmem>>, vector<128x128xbf16>,
    %c1 = arith.constant 1 : index
    %c0_16 = arith.constant 0 : index
    %c0_17 = arith.constant 0 : index
    %23 = vector.load %arg2[%c1, %c0_16, %c0_17] : memref<2x128x128xbf16, #tpu.memory_space<vmem>>, vector<1x128x128xbf16>
    %24 = vector.shape_cast %23 : vector<1x128x128xbf16> to vector<128x128xbf16>
    %cst_18 = arith.constant dense<0.000000e+00> : vector<128x128xf32>
    %25 = tpu.matmul %24, %21, %cst_18 {dimension_numbers = #tpu.dot_dimension_numbers<[1], [0], [0], [1], [0, 0, 1, 1], [], []>} : vector<128x128xbf16>, vector<128x128xbf16>, vector<128x128xf32> -> vector<128x128xf32>
    %cst_19 = arith.constant 2.000000e+00 : f32
    %26 = vector.broadcast %cst_19 : f32 to vector<128x128xf32>
    %27 = arith.mulf %26, %25 : vector<128x128xf32>
    %28 = arith.subf %27, %8 : vector<128x128xf32>
    %29 = arith.truncf %28 : vector<128x128xf32> to vector<128x128xbf16>
    %c0_20 = arith.constant 0 : index
    %c640 = arith.constant 640 : index
    %30 = vector.load %arg7[%c0_20, %c640] : memref<128x768xbf16, #tpu.memory_space<vmem>>, vector<128x128xbf16>
    tpu.vector_store %arg7[%c0_20, %c640], %29 {strides = array<i32>} : memref<128x768xbf16, #tpu.memory_space<vmem>>, vector<128x128xbf16>,
    %c0_21 = arith.constant 0 : index
    %c0_22 = arith.constant 0 : index
    %31 = vector.load %arg7[%c0_21, %c0_22] : memref<128x768xbf16, #tpu.memory_space<vmem>>, vector<128x768xbf16>
    %c0_23 = arith.constant 0 : index
    %c0_24 = arith.constant 0 : index
    %c0_25 = arith.constant 0 : index
    %32 = vector.load %arg3[%c0_23, %c0_24, %c0_25] : memref<1x768x128xbf16, #tpu.memory_space<vmem>>, vector<1x768x128xbf16>
    %33 = vector.shape_cast %32 : vector<1x768x128xbf16> to vector<768x128xbf16>
    %cst_26 = arith.constant dense<0.000000e+00> : vector<128x128xf32>
    %34 = tpu.matmul %31, %33, %cst_26 {dimension_numbers = #tpu.dot_dimension_numbers<[1], [0], [0], [1], [0, 0, 1, 1], [], []>} : vector<128x768xbf16>, vector<768x128xbf16>, vector<128x128xf32> -> vector<128x128xf32>
    %c0_27 = arith.constant 0 : index
    %c0_28 = arith.constant 0 : index
    %c0_29 = arith.constant 0 : index
    %35 = vector.load %arg4[%c0_27, %c0_28, %c0_29] : memref<1x1x128xf32, #tpu.memory_space<vmem>>, vector<1x1x128xf32>
    %36 = vector.shape_cast %35 : vector<1x1x128xf32> to vector<1x128xf32>
    %37 = vector.broadcast %36 : vector<1x128xf32> to vector<128x128xf32>
    %38 = arith.addf %34, %37 : vector<128x128xf32>
    %cst_30 = arith.constant 0.000000e+00 : f32
    %39 = vector.broadcast %cst_30 : f32 to vector<128x128xf32>
    %40 = arith.maximumf %38, %39 : vector<128x128xf32>
    %41 = arith.truncf %40 : vector<128x128xf32> to vector<128x128xbf16>
    %c0_31 = arith.constant 0 : index
    %c0_32 = arith.constant 0 : index
    %42 = vector.load %arg6[%c0_31, %c0_32] : memref<128x128xbf16, #tpu.memory_space<vmem>>, vector<128x128xbf16>
    tpu.vector_store %arg6[%c0_31, %c0_32], %41 {strides = array<i32>} : memref<128x128xbf16, #tpu.memory_space<vmem>>, vector<128x128xbf16>,
    %c2_i32 = arith.constant 2 : i32
    %43 = arith.cmpi eq, %arg0, %c2_i32 : i32
    %44 = arith.extui %43 : i1 to i32
    %c0_i32_33 = arith.constant 0 : i32
    %45 = arith.cmpi ne, %44, %c0_i32_33 : i32
    scf.if %45 {
      %c0_34 = arith.constant 0 : index
      %c0_35 = arith.constant 0 : index
      %46 = vector.load %arg5[%c0_34, %c0_35] : memref<128x128xf32, #tpu.memory_space<vmem>>, vector<128x128xf32>
      tpu.vector_store %arg5[%c0_34, %c0_35], %38 {strides = array<i32>} : memref<128x128xf32, #tpu.memory_space<vmem>>, vector<128x128xf32>,
    } else {
    }
    return
  }
  func.func @transform_0(%arg0: i32) -> (i32, i32) {
    %c0_i32 = arith.constant 0 : i32
    %c0_i32_0 = arith.constant 0 : i32
    %c0_i32_1 = arith.constant 0 : i32
    return %c0_i32, %c0_i32_0 : i32, i32
  }
  func.func @transform_1(%arg0: i32) -> (i32, i32, i32) {
    %c0_i32 = arith.constant 0 : i32
    %c0_i32_0 = arith.constant 0 : i32
    %c0_i32_1 = arith.constant 0 : i32
    %c0_i32_2 = arith.constant 0 : i32
    return %c0_i32, %c0_i32_0, %c0_i32_1 : i32, i32, i32
  }
  func.func @transform_2(%arg0: i32) -> (i32, i32, i32) {
    %c0_i32 = arith.constant 0 : i32
    %c0_i32_0 = arith.constant 0 : i32
    %c0_i32_1 = arith.constant 0 : i32
    return %arg0, %c0_i32, %c0_i32_0 : i32, i32, i32
  }
  func.func @transform_3(%arg0: i32) -> (i32, i32, i32) {
    %c0_i32 = arith.constant 0 : i32
    %c0_i32_0 = arith.constant 0 : i32
    %c0_i32_1 = arith.constant 0 : i32
    return %arg0, %c0_i32, %c0_i32_0 : i32, i32, i32
  }
  func.func @transform_4(%arg0: i32) -> (i32, i32) {
    %c0_i32 = arith.constant 0 : i32
    %c0_i32_0 = arith.constant 0 : i32
    %c0_i32_1 = arith.constant 0 : i32
    return %c0_i32, %c0_i32_0 : i32, i32
  }
}

</mosaic_0001>

<bundles_post_ra>
// kernel: _forward_core.2
= control target key start
LH: loop header
LB: loop body
LE: loop exit
PB: predicated region body
PF: predicated region fallthrough
CT: control target
= control target key end

     0   :  { %10 = vsyncpa [#allocation3], 0  ;;  %s355_s18 = smov [#allocation2]   ;;  %s544_s0 = inlined_call_operand.vmem [shape: f32[48,128], index: 0, kind: input, shape index: {}]   ;;  %s545_s1 = inlined_call_operand.vmem [shape: f32[128,128], index: 1, kind: input, shape index: {}]   ;;  %s546_s2 = inlined_call_operand.vmem [shape: f32[1,128], index: 2, kind: input, shape index: {}]   ;;  %s547_s3 = inlined_call_operand.hbm [shape: f32[128,128], index: 3, kind: input, shape index: {}]   ;;  %s548_s4 = inlined_call_operand.vmem [shape: f32[1,128], index: 4, kind: input, shape index: {}]   ;;  %s549_s5 = inlined_call_operand.vmem [shape: f32[48,128], index: 5, kind: output, shape index: {}]  }
   0x1   :  { %s22_s19 = sshll.u32 %s355_s18, 4  ;;  %s331_s22 = scalar_lea.hbm %s547_s3, 2048  ;;  %s23_s19 = int_to_ptr.vmem [resolvable:$true] %s22_s19 }
   0x2   :  { %p332_p0 = scmp.ne.s32.totalorder %s547_s3, %s331_s22  ;;  %p335_p1 = scmp.lt.u32.totalorder %s331_s22, %s547_s3 }
   0x4   :  { %p337_p2 = pnand %p335_p1, %p332_p0 }
   0x6   :  { %340 = shalt.err (!%p337_p2)
}
   0x7   :  { %s341_s27 = scalar_lea.vmem %s23_s19, 2048  ;;  %p346_p4 = scmp.lt.s32.totalorder %s23_s19, %s23_s19 }
   0x8   :  { %p342_p3 = scmp.ne.s32.totalorder %s23_s19, %s341_s27  ;;  %p347_p5 = scmp.lt.s32.totalorder %s341_s27, %s341_s27 }
   0xa   :  { %p348_p6 = por %p347_p5, %p346_p4 }
   0xc   :  { %p349_p7 = pnand %p348_p6, %p342_p3 }
   0xe   :  { %352 = shalt.err (!%p349_p7)
}
   0xf   :  { %s356_s28 = smov 128   ;;  %s357_s29 = smov 8  }
  0x10   :  { %28 = dma.hbm_to_vmem [thread:$0]  %s547_s3, 2048, %s23_s19, [#allocation3], %s356_s28, %s356_s28, %s357_s29  }
  0x11   :  { %353 = dma.done.wait [#allocation3], 2048  }
  0x12   :  { %354 = vsyncadd [#allocation3], 4294965248  ;;  %v358_v0 = vmov 0.0   ;;  %vm359_vm0 = vmmov 0   ;;  %v44_v1 = vld [vmem:[%s545_s1] sm:$0xff]  ;;  %v45_v2 = vld [vmem:[%s545_s1 + $0x8] sm:$0xff] }
  0x13   :  { %270 = vmatprep.subr.bf16.mxu0 %v358_v0  ;;  %286 = vmatprep.mubr.msk.bf16.mxu0 %vm359_vm0, %v358_v0  ;;  %v46_v3 = vld [vmem:[%s545_s1 + $0x10] sm:$0xff]  ;;  %v60_v4 = vpack.c.bf16 %v45_v2, %v44_v1  ;;  %v47_v5 = vld [vmem:[%s545_s1 + $0x18] sm:$0xff]  ;;  %v48_v7 = vld [vmem:[%s545_s1 + $0x20] sm:$0xff] }
  0x14   :  { %298 = vmatprep.subr.bf16.mxu1 %v358_v0  ;;  %314 = vmatprep.mubr.msk.bf16.mxu1 %vm359_vm0, %v358_v0  ;;  %v61_v6 = vpack.c.bf16 %v47_v5, %v46_v3  ;;  %v49_v8 = vld [vmem:[%s545_s1 + $0x28] sm:$0xff]  ;;  %v50_v10 = vld [vmem:[%s545_s1 + $0x30] sm:$0xff]  ;;  %v141_v11 = vld [vmem:[#allocation2] sm:$0xff] }
  0x15   :  { %271 = vmatpush3.bf16.msra.mxu0 %v60_v4  ;;  %v62_v9 = vpack.c.bf16 %v49_v8, %v48_v7  ;;  %v142_v12 = vld [vmem:[#allocation2 + $0x8] sm:$0xff]  ;;  %v51_v13 = vld [vmem:[%s545_s1 + $0x38] sm:$0xff]  ;;  %v143_v15 = vld [vmem:[#allocation2 + $0x10] sm:$0xff] }
  0x16   :  { %272 = vmatprep.subr.bf16.mxu0 %v358_v0  ;;  %v157_v14 = vpack.c.bf16 %v142_v12, %v141_v11  ;;  %v144_v16 = vld [vmem:[#allocation2 + $0x18] sm:$0xff]  ;;  %v63_v18 = vpack.c.bf16 %v51_v13, %v50_v10  ;;  %v145_v19 = vld [vmem:[#allocation2 + $0x20] sm:$0xff]  ;;  %v146_v20 = vld [vmem:[#allocation2 + $0x28] sm:$0xff] }
  0x17   :  { %v158_v17 = vpack.c.bf16 %v144_v16, %v143_v15  ;;  %v52_v21 = vld [vmem:[%s545_s1 + $0x40] sm:$0xff]  ;;  %v53_v22 = vld [vmem:[%s545_s1 + $0x48] sm:$0xff]  ;;  %v159_v23 = vpack.c.bf16 %v146_v20, %v145_v19  ;;  %v147_v25 = vld [vmem:[#allocation2 + $0x30] sm:$0xff] }
  0x18   :  { %299 = vmatpush3.bf16.msra.mxu1 %v157_v14  ;;  %v64_v24 = vpack.c.bf16 %v53_v22, %v52_v21  ;;  %v148_v26 = vld [vmem:[#allocation2 + $0x38] sm:$0xff]  ;;  %v54_v27 = vld [vmem:[%s545_s1 + $0x50] sm:$0xff]  ;;  %v149_v31 = vld [vmem:[#allocation2 + $0x40] sm:$0xff] }
  0x19   :  { %273 = vmatpush3.bf16.msra.mxu0 %v61_v6  ;;  %300 = vmatprep.subr.bf16.mxu1 %v358_v0  ;;  %v55_v28 = vld [vmem:[%s545_s1 + $0x58] sm:$0xff]  ;;  %v160_v29 = vpack.c.bf16 %v148_v26, %v147_v25  ;;  %v150_v32 = vld [vmem:[#allocation2 + $0x48] sm:$0xff]  ;;  %v56_v33 = vld [vmem:[%s545_s1 + $0x60] sm:$0xff] }
  0x1a   :  { %274 = vmatprep.subr.bf16.mxu0 %v358_v0  ;;  %v65_v30 = vpack.c.bf16 %v55_v28, %v54_v27  ;;  %v57_v34 = vld [vmem:[%s545_s1 + $0x68] sm:$0xff]  ;;  %v161_v35 = vpack.c.bf16 %v150_v32, %v149_v31  ;;  %v151_v37 = vld [vmem:[#allocation2 + $0x50] sm:$0xff]  ;;  %v152_v38 = vld [vmem:[#allocation2 + $0x58] sm:$0xff] }
  0x1b   :  { %v66_v36 = vpack.c.bf16 %v57_v34, %v56_v33  ;;  %v58_v39 = vld [vmem:[%s545_s1 + $0x70] sm:$0xff]  ;;  %v59_v40 = vld [vmem:[%s545_s1 + $0x78] sm:$0xff]  ;;  %v162_v41 = vpack.c.bf16 %v152_v38, %v151_v37  ;;  %v469_v43 = vld [vmem:[%s544_s0] sm:$0xff] }
  0x1c   :  { %301 = vmatpush3.bf16.msra.mxu1 %v158_v17  ;;  %v67_v42 = vpack.c.bf16 %v59_v40, %v58_v39  ;;  %v474_v44 = vld [vmem:[%s544_s0 + $0x8] sm:$0xff]  ;;  %v486_v46 = vld [vmem:[%s544_s0 + $0x10] sm:$0xff]  ;;  %v491_v47 = vld [vmem:[%s544_s0 + $0x18] sm:$0xff] }
  0x1d   :  { %275 = vmatpush3.bf16.msra.mxu0 %v62_v9  ;;  %302 = vmatprep.subr.bf16.mxu1 %v358_v0  ;;  %v41_v45 = vpack.c.bf16 %v474_v44, %v469_v43  ;;  %v42_v48 = vpack.c.bf16 %v491_v47, %v486_v46  ;;  %v500_v49 = vld [vmem:[%s544_s0 + $0x20] sm:$0xff]  ;;  %v505_v50 = vld [vmem:[%s544_s0 + $0x28] sm:$0xff]  ;;  %v155_v55 = vld [vmem:[#allocation2 + $0x70] sm:$0xff] }
  0x1e   :  { %276 = vmatprep.subr.bf16.mxu0 %v358_v0  ;;  %v43_v51 = vpack.c.bf16 %v505_v50, %v500_v49  ;;  %v153_v52 = vld [vmem:[#allocation2 + $0x60] sm:$0xff]  ;;  %v154_v53 = vld [vmem:[#allocation2 + $0x68] sm:$0xff]  ;;  %v156_v56 = vld [vmem:[#allocation2 + $0x78] sm:$0xff] }
  0x1f   :  { %v163_v54 = vpack.c.bf16 %v154_v53, %v153_v52  ;;  %v164_v57 = vpack.c.bf16 %v156_v56, %v155_v55  ;;  %v246_v58 = vld [vmem:[%s546_s2] ss:$0 sm:$0xff] }
  0x20   :  { %303 = vmatpush3.bf16.msra.mxu1 %v159_v23  ;;  %v247_v23 = vld [vmem:[%s548_s4] ss:$0 sm:$0xff] }
  0x21   :  { %277 = vmatpush3.bf16.msra.mxu0 %v63_v18  ;;  %304 = vmatprep.subr.bf16.mxu1 %v358_v0 }
  0x22   :  { %278 = vmatprep.subr.bf16.mxu0 %v358_v0 }
  0x24   :  { %305 = vmatpush3.bf16.msra.mxu1 %v160_v29 }
  0x25   :  { %279 = vmatpush3.bf16.msra.mxu0 %v64_v24  ;;  %306 = vmatprep.subr.bf16.mxu1 %v358_v0 }
  0x26   :  { %280 = vmatprep.subr.bf16.mxu0 %v358_v0 }
  0x28   :  { %307 = vmatpush3.bf16.msra.mxu1 %v161_v35 }
  0x29   :  { %281 = vmatpush3.bf16.msra.mxu0 %v65_v30  ;;  %308 = vmatprep.subr.bf16.mxu1 %v358_v0 }
  0x2a   :  { %282 = vmatprep.subr.bf16.mxu0 %v358_v0 }
  0x2c   :  { %309 = vmatpush3.bf16.msra.mxu1 %v162_v41 }
  0x2d   :  { %283 = vmatpush3.bf16.msra.mxu0 %v66_v36  ;;  %310 = vmatprep.subr.bf16.mxu1 %v358_v0 }
  0x2e   :  { %284 = vmatprep.subr.bf16.mxu0 %v358_v0 }
  0x30   :  { %311 = vmatpush3.bf16.msra.mxu1 %v163_v54 }
  0x31   :  { %285 = vmatpush3.bf16.msra.mxu0 %v67_v42  ;;  %312 = vmatprep.subr.bf16.mxu1 %v358_v0 }
  0x34   :  { %287 = vmatmul.mubr.bf16.vlgmr.msra.gmra.mrb[0].mxu0 %v41_v45  ;;  %313 = vmatpush3.bf16.msra.mxu1 %v164_v57 }
  0x35   :  { %290 = vmatprep.mubr.msk.bf16.mxu0 %vm359_vm0, %v358_v0 }
  0x3c   :  { %291 = vmatmul.mubr.bf16.gmra.mrb[4].mxu0 %v42_v48 }
  0x3d   :  { %294 = vmatprep.mubr.msk.bf16.mxu0 %vm359_vm0, %v358_v0 }
  0x44   :  { %295 = vmatmul.mubr.bf16.gmra.mrb[8].mxu0 %v43_v51 }
 0x107   :  { %v109_v59 = vpop.f32.mrb[0].mxu0 }
 0x108   :  { %v110_v60 = vadd.f32 %v246_v58, %v109_v59  ;;  %v288_v61 = vpop.f32.mrb[1].mxu0 }
 0x109   :  { %v112_v62 = vpop.f32.mrb[2].mxu0 }
 0x10a   :  { %v113_v63 = vadd.f32 %v246_v58, %v112_v62  ;;  %v289_v1 = vpop.f32.mrb[3].mxu0  ;;  %v132_v2 = vmax.f32 %v110_v60, 0.0 }
 0x10c   :  { %v133_v3 = vmax.f32 %v113_v63, 0.0 }
 0x10e   :  { %v138_v4 = vpack.c.bf16 %v133_v3, %v132_v2 }
 0x10f   :  { %v117_v5 = vpop.f32.mrb[4].mxu0 }
 0x110   :  { %v118_v6 = vadd.f32 %v246_v58, %v117_v5  ;;  %v292_v7 = vpop.f32.mrb[5].mxu0  ;;  %315 = vmatmul.mubr.bf16.vlgmr.msra.gmra.mrb[0].mxu1 %v138_v4 }
 0x111   :  { %v120_v8 = vpop.f32.mrb[6].mxu0  ;;  %318 = vmatprep.mubr.msk.bf16.mxu1 %vm359_vm0, %v358_v0 }
 0x112   :  { %v121_v9 = vadd.f32 %v246_v58, %v120_v8  ;;  %v293_v10 = vpop.f32.mrb[7].mxu0  ;;  %v134_v11 = vmax.f32 %v118_v6, 0.0 }
 0x114   :  { %v135_v12 = vmax.f32 %v121_v9, 0.0 }
 0x116   :  { %v139_v13 = vpack.c.bf16 %v135_v12, %v134_v11 }
 0x117   :  { %v125_v14 = vpop.f32.mrb[8].mxu0 }
 0x118   :  { %v126_v15 = vadd.f32 %v246_v58, %v125_v14  ;;  %v296_v16 = vpop.f32.mrb[9].mxu0  ;;  %319 = vmatmul.mubr.bf16.gmra.mrb[4].mxu1 %v139_v13 }
 0x119   :  { %v128_v17 = vpop.f32.mrb[10].mxu0  ;;  %322 = vmatprep.mubr.msk.bf16.mxu1 %vm359_vm0, %v358_v0 }
 0x11a   :  { %v129_v18 = vadd.f32 %v246_v58, %v128_v17  ;;  %v297_v19 = vpop.f32.mrb[11].mxu0  ;;  %v136_v20 = vmax.f32 %v126_v15, 0.0 }
 0x11c   :  { %v137_v21 = vmax.f32 %v129_v18, 0.0 }
 0x11e   :  { %v140_v22 = vpack.c.bf16 %v137_v21, %v136_v20 }
 0x120   :  { %323 = vmatmul.mubr.bf16.gmra.mrb[8].mxu1 %v140_v22 }
 0x1e3   :  { %v206_v24 = vpop.f32.mrb[0].mxu1 }
 0x1e4   :  { %v207_v25 = vadd.f32 %v247_v23, %v206_v24  ;;  %v316_v26 = vpop.f32.mrb[1].mxu1 }
 0x1e5   :  { %v209_v27 = vpop.f32.mrb[2].mxu1 }
 0x1e6   :  { %v229_v28 = vadd.f32 %v207_v25, %v469_v43  ;;  %v210_v29 = vadd.f32 %v247_v23, %v209_v27  ;;  %v317_v30 = vpop.f32.mrb[3].mxu1 }
 0x1e8   :  { %235 = vst [vmem:[%s549_s5] sm:$0xff] %v229_v28  ;;  %v230_v0 = vadd.f32 %v210_v29, %v474_v44 }
 0x1ea   :  { %236 = vst [vmem:[%s549_s5 + $0x8] sm:$0xff] %v230_v0 }
 0x1eb   :  { %v214_v31 = vpop.f32.mrb[4].mxu1 }
 0x1ec   :  { %v215_v32 = vadd.f32 %v247_v23, %v214_v31  ;;  %v320_v33 = vpop.f32.mrb[5].mxu1 }
 0x1ed   :  { %v217_v34 = vpop.f32.mrb[6].mxu1 }
 0x1ee   :  { %v231_v35 = vadd.f32 %v215_v32, %v486_v46  ;;  %v218_v36 = vadd.f32 %v247_v23, %v217_v34  ;;  %v321_v37 = vpop.f32.mrb[7].mxu1 }
 0x1f0   :  { %237 = vst [vmem:[%s549_s5 + $0x10] sm:$0xff] %v231_v35  ;;  %v232_v38 = vadd.f32 %v218_v36, %v491_v47 }
 0x1f2   :  { %238 = vst [vmem:[%s549_s5 + $0x18] sm:$0xff] %v232_v38 }
 0x1f3   :  { %v222_v39 = vpop.f32.mrb[8].mxu1 }
 0x1f4   :  { %v223_v40 = vadd.f32 %v247_v23, %v222_v39  ;;  %v324_v41 = vpop.f32.mrb[9].mxu1 }
 0x1f5   :  { %v225_v42 = vpop.f32.mrb[10].mxu1 }
 0x1f6   :  { %v233_v43 = vadd.f32 %v223_v40, %v500_v49  ;;  %v226_v44 = vadd.f32 %v247_v23, %v225_v42  ;;  %v325_v45 = vpop.f32.mrb[11].mxu1 }
 0x1f8   :  { %239 = vst [vmem:[%s549_s5 + $0x20] sm:$0xff] %v233_v43  ;;  %v234_v46 = vadd.f32 %v226_v44, %v505_v50 }
 0x1fa   :  { %240 = vst [vmem:[%s549_s5 + $0x28] sm:$0xff] %v234_v46 }
 0x1fb   :  { %245 = vsyncpa [#allocation3], 1 }

// kernel: _forward_core.3
= control target key start
LH: loop header
LB: loop body
LE: loop exit
PB: predicated region body
PF: predicated region fallthrough
CT: control target
= control target key end

     0   :  { %s2500_s15 = smov 0   ;;  %s3066_s0 = inlined_call_operand.vmem [shape: bf16[128,128], index: 0, kind: input, shape index: {}]   ;;  %s3067_s1 = inlined_call_operand.vmem [shape: bf16[2,128,128], index: 1, kind: input, shape index: {}]   ;;  %s3068_s2 = inlined_call_operand.vmem [shape: bf16[3,768,128], index: 2, kind: input, shape index: {}]   ;;  %s3069_s3 = inlined_call_operand.vmem [shape: f32[3,1,128], index: 3, kind: input, shape index: {}]   ;;  %s3070_s4 = inlined_call_operand.vmem [shape: f32[128,128], index: 4, kind: output, shape index: {}]  }
   0x1 LB: > { %s2506_s16 = sadd.s32 4294967295, %s2473_s15   ;;  %p1876_p0 = scmp.ge.s32.totalorder %s2473_s15, 1  ;;  %s2473_s15 = sphi %s2500_s15, %s14_s15  }
   0x2   : > { %p165_p1 = scmp.lt.s32.totalorder %s2473_s15, 4 }
   0x4   : > { %p166_p2 = pnand %p1876_p0, %p165_p1 }
   0x5   : > { %p189_p3 = scmp.lt.s32.totalorder (!%p166_p2), %s2506_s16, 2  ;;  %p1878_p4 = scmp.ne.s32.totalorder (!%p166_p2), %s2506_s16, 0 }
   0x6   : > { %169 = sbr.rel (%p166_p2) target bundleno = 838 (0x346), region = 36 }
   0xd   : > { %s2512_s17 = scalar_select %p189_p3, %s2506_s16, 2 }
   0xe   : > { %201 = sbr.rel (%p1878_p4) target bundleno = 21 (0x15), region = 40  ;;  %v2372_v0 = vld [vmem:[%s3066_s0] sm:$0xff] (!%p1878_p4)   ;;  %v2373_v1 = vld [vmem:[%s3066_s0 + $0x8] sm:$0xff] (!%p1878_p4)   ;;  %v2374_v2 = vld [vmem:[%s3066_s0 + $0x10] sm:$0xff] (!%p1878_p4)  }
   0xf   : > { %s2363_s18 = smul.u32 384, %s2512_s17  ;;  %s196_s21 = scalar_lea.vmem %s3069_s3, %s2512_s17  ;;  %266 = vst [vmem:[#allocation2] sm:$0xff] (!%p1878_p4), %v2372_v0  ;;  %267 = vst [vmem:[#allocation2 + $0x8] sm:$0xff] (!%p1878_p4), %v2373_v1  ;;  %v2375_v3 = vld [vmem:[%s3066_s0 + $0x18] sm:$0xff] (!%p1878_p4)   ;;  %v2376_v4 = vld [vmem:[%s3066_s0 + $0x20] sm:$0xff] (!%p1878_p4)  }
  0x10   : > { %268 = vst [vmem:[#allocation2 + $0x10] sm:$0xff] (!%p1878_p4), %v2374_v2  ;;  %269 = vst [vmem:[#allocation2 + $0x18] sm:$0xff] (!%p1878_p4), %v2375_v3  ;;  %v2377_v5 = vld [vmem:[%s3066_s0 + $0x28] sm:$0xff] (!%p1878_p4)   ;;  %v2378_v6 = vld [vmem:[%s3066_s0 + $0x30] sm:$0xff] (!%p1878_p4)  }
  0x11   : > { %s2522_s24 = scalar_lea.vmem %s3068_s2, %s2363_s18  ;;  %270 = vst [vmem:[#allocation2 + $0x20] sm:$0xff] (!%p1878_p4), %v2376_v4  ;;  %271 = vst [vmem:[#allocation2 + $0x28] sm:$0xff] (!%p1878_p4), %v2377_v5  ;;  %v2379_v7 = vld [vmem:[%s3066_s0 + $0x38] sm:$0xff] (!%p1878_p4)  }
  0x12   : > { %272 = vst [vmem:[#allocation2 + $0x30] sm:$0xff] (!%p1878_p4), %v2378_v6  ;;  %273 = vst [vmem:[#allocation2 + $0x38] sm:$0xff] (!%p1878_p4), %v2379_v7 }
  0x15 PF: > { %v2380_v10 = vld [vmem:[%s3067_s1] sm:$0xff]   ;;  %v2381_v18 = vld [vmem:[%s3067_s1 + $0x8] sm:$0xff]   ;;  %v2382_v20 = vld [vmem:[%s3067_s1 + $0x10] sm:$0xff]   ;;  %p1984_p5 = scmp.ne.s32.totalorder %s2506_s16, 2 }
  0x16   : > { %v2549_v8 = vld [vmem:[#allocation2] sm:$0xff]  ;;  %v2551_v9 = vld [vmem:[#allocation2 + $0x8] sm:$0xff]  ;;  %2251 = vmatprep.mubr.bf16.mxu0 %v2380_v10  ;;  %v2390_v22 = vld [vmem:[%s3067_s1 + $0x50] sm:$0xff]  }
  0x17   : > { %2235 = vmatprep.subr.bf16.mxu0 %v2549_v8  ;;  %2347 = vmatprep.subr.bf16.mxu1 %v2549_v8  ;;  %v2562_v11 = vld [vmem:[#allocation2 + $0x10] sm:$0xff]  ;;  %v2568_v12 = vld [vmem:[#allocation2 + $0x18] sm:$0xff]  ;;  %v2388_v13 = vld [vmem:[%s3067_s1 + $0x40] sm:$0xff]  }
  0x18   : > { %2236 = vmatpush3.bf16.msra.mxu0 %v2549_v8  ;;  %2355 = vmatpush3.bf16.msra.mxu1 %v2549_v8  ;;  %v2577_v14 = vld [vmem:[#allocation2 + $0x20] sm:$0xff]  ;;  %v2583_v15 = vld [vmem:[#allocation2 + $0x28] sm:$0xff]  ;;  %v2400_v26 = vld [vmem:[%s2522_s24 + $0x50] sm:$0xff]  }
  0x19   : > { %2237 = vmatprep.subr.bf16.mxu0 %v2551_v9  ;;  %2348 = vmatprep.subr.bf16.mxu1 %v2551_v9  ;;  %v2589_v16 = vld [vmem:[#allocation2 + $0x30] sm:$0xff]  ;;  %v2595_v17 = vld [vmem:[#allocation2 + $0x38] sm:$0xff]  ;;  %v2396_v19 = vld [vmem:[%s2522_s24 + $0x40] sm:$0xff]  }
  0x1a   : > { %2267 = vmatprep.mubr.bf16.mxu1 %v2388_v13  ;;  %v2389_v21 = vld [vmem:[%s3067_s1 + $0x48] sm:$0xff]   ;;  %v2397_v23 = vld [vmem:[%s2522_s24] sm:$0xff]   ;;  %v2383_v27 = vld [vmem:[%s3067_s1 + $0x18] sm:$0xff]  }
  0x1b   : > { %v2398_v24 = vld [vmem:[%s2522_s24 + $0x48] sm:$0xff]   ;;  %v2391_v28 = vld [vmem:[%s3067_s1 + $0x58] sm:$0xff]   ;;  %v2384_v29 = vld [vmem:[%s3067_s1 + $0x20] sm:$0xff]  }
  0x1c   : > { %2238 = vmatpush3.bf16.msra.mxu0 %v2551_v9  ;;  %2356 = vmatpush3.bf16.msra.mxu1 %v2551_v9  ;;  %v2399_v25 = vld [vmem:[%s2522_s24 + $0x8] sm:$0xff]   ;;  %v2392_v30 = vld [vmem:[%s3067_s1 + $0x60] sm:$0xff]   ;;  %v2401_v31 = vld [vmem:[%s2522_s24 + $0x10] sm:$0xff]  }
  0x1d   : > { %2239 = vmatprep.subr.bf16.mxu0 %v2562_v11  ;;  %2349 = vmatprep.subr.bf16.mxu1 %v2562_v11  ;;  %v2402_v32 = vld [vmem:[%s2522_s24 + $0x58] sm:$0xff]   ;;  %v2404_v34 = vld [vmem:[%s2522_s24 + $0x60] sm:$0xff]   ;;  %v2385_v35 = vld [vmem:[%s3067_s1 + $0x28] sm:$0xff]  }
  0x1e   : > { %v2403_v33 = vld [vmem:[%s2522_s24 + $0x18] sm:$0xff]   ;;  %v2393_v36 = vld [vmem:[%s3067_s1 + $0x68] sm:$0xff]   ;;  %v2386_v37 = vld [vmem:[%s3067_s1 + $0x30] sm:$0xff]  }
  0x1f   : > { %v2394_v38 = vld [vmem:[%s3067_s1 + $0x70] sm:$0xff]   ;;  %v2405_v39 = vld [vmem:[%s2522_s24 + $0x20] sm:$0xff]   ;;  %v2406_v40 = vld [vmem:[%s2522_s24 + $0x68] sm:$0xff]  }
  0x20   : > { %2240 = vmatpush3.bf16.msra.mxu0 %v2562_v11  ;;  %2357 = vmatpush3.bf16.msra.mxu1 %v2562_v11  ;;  %v2407_v41 = vld [vmem:[%s2522_s24 + $0x28] sm:$0xff]   ;;  %v2408_v42 = vld [vmem:[%s2522_s24 + $0x70] sm:$0xff]   ;;  %v2387_v43 = vld [vmem:[%s3067_s1 + $0x38] sm:$0xff]  }
  0x21   : > { %2241 = vmatprep.subr.bf16.mxu0 %v2568_v12  ;;  %2350 = vmatprep.subr.bf16.mxu1 %v2568_v12  ;;  %v2395_v44 = vld [vmem:[%s3067_s1 + $0x78] sm:$0xff]   ;;  %v2409_v45 = vld [vmem:[%s2522_s24 + $0x30] sm:$0xff]   ;;  %v2412_v48 = vld [vmem:[%s3067_s1] sm:$0xff]  }
  0x22   : > { %v2410_v46 = vld [vmem:[%s2522_s24 + $0x78] sm:$0xff]   ;;  %v2430_v49 = vld [vmem:[%s2522_s24 + $0x140] sm:$0xff]   ;;  %v2436_v63 = vld [vmem:[%s2522_s24 + $0x148] sm:$0xff]  }
  0x23   : > { %v2411_v47 = vld [vmem:[%s2522_s24 + $0x38] sm:$0xff]   ;;  %v2431_v62 = vld [vmem:[%s2522_s24 + $0x100] sm:$0xff]   ;;  %v2437_v4 = vld [vmem:[%s2522_s24 + $0x108] sm:$0xff]  }
  0x24   : > { %2242 = vmatpush3.bf16.msra.mxu0 %v2568_v12  ;;  %2358 = vmatpush3.bf16.msra.mxu1 %v2568_v12  ;;  %v2442_v7 = vld [vmem:[%s2522_s24 + $0x150] sm:$0xff]  }
  0x25   : > { %2243 = vmatprep.subr.bf16.mxu0 %v2577_v14  ;;  %2351 = vmatprep.subr.bf16.mxu1 %v2577_v14 }
  0x28   : > { %2244 = vmatpush3.bf16.msra.mxu0 %v2577_v14  ;;  %2359 = vmatpush3.bf16.msra.mxu1 %v2577_v14 }
  0x29   : > { %2245 = vmatprep.subr.bf16.mxu0 %v2583_v15  ;;  %2352 = vmatprep.subr.bf16.mxu1 %v2583_v15 }
  0x2c   : > { %2246 = vmatpush3.bf16.msra.mxu0 %v2583_v15  ;;  %2360 = vmatpush3.bf16.msra.mxu1 %v2583_v15 }
  0x2d   : > { %2247 = vmatprep.subr.bf16.mxu0 %v2589_v16  ;;  %2353 = vmatprep.subr.bf16.mxu1 %v2589_v16 }
  0x30   : > { %2248 = vmatpush3.bf16.msra.mxu0 %v2589_v16  ;;  %2361 = vmatpush3.bf16.msra.mxu1 %v2589_v16 }
  0x31   : > { %2249 = vmatprep.subr.bf16.mxu0 %v2595_v17  ;;  %2354 = vmatprep.subr.bf16.mxu1 %v2595_v17 }
  0x34   : > { %2250 = vmatpush3.bf16.msra.mxu0 %v2595_v17  ;;  %2362 = vmatpush3.bf16.msra.mxu1 %v2595_v17 }
  0x35   : > { %2043 = vmatprep.subr.bf16.mxu0 %v2396_v19 }
  0x37   : > { %2252 = vmatmul.mubr.bf16.vlgmr.msra.gmra.mrb[0].mxu0 %v2381_v18  ;;  %2268 = vmatmul.mubr.bf16.vlgmr.msra.gmra.mrb[0].mxu1 %v2389_v21 }
  0x38   : > { %2255 = vmatprep.mubr.bf16.mxu0 %v2382_v20  ;;  %2271 = vmatprep.mubr.bf16.mxu1 %v2390_v22  ;;  %v2443_v22 = vld [vmem:[%s2522_s24 + $0x110] sm:$0xff]  }
  0x39   : > { %2044 = vmatpush3.bf16.msra.mxu0 %v2397_v23 }
  0x3a   : > { %2045 = vmatprep.subr.bf16.mxu0 %v2398_v24 }
  0x3d   : > { %2046 = vmatpush3.bf16.msra.mxu0 %v2399_v25 }
  0x3e   : > { %2047 = vmatprep.subr.bf16.mxu0 %v2400_v26 }
  0x3f   : > { %2256 = vmatmul.mubr.bf16.gmra.mrb[4].mxu0 %v2383_v27  ;;  %2272 = vmatmul.mubr.bf16.gmra.mrb[4].mxu1 %v2391_v28 }
  0x40   : > { %2259 = vmatprep.mubr.bf16.mxu0 %v2384_v29  ;;  %2275 = vmatprep.mubr.bf16.mxu1 %v2392_v30 }
  0x41   : > { %2048 = vmatpush3.bf16.msra.mxu0 %v2401_v31 }
  0x42   : > { %2049 = vmatprep.subr.bf16.mxu0 %v2402_v32 }
  0x45   : > { %2050 = vmatpush3.bf16.msra.mxu0 %v2403_v33 }
  0x46   : > { %2051 = vmatprep.subr.bf16.mxu0 %v2404_v34 }
  0x47   : > { %2260 = vmatmul.mubr.bf16.gmra.mrb[8].mxu0 %v2385_v35  ;;  %2276 = vmatmul.mubr.bf16.gmra.mrb[8].mxu1 %v2393_v36 }
  0x48   : > { %2263 = vmatprep.mubr.bf16.mxu0 %v2386_v37  ;;  %2279 = vmatprep.mubr.bf16.mxu1 %v2394_v38 }
  0x49   : > { %2052 = vmatpush3.bf16.msra.mxu0 %v2405_v39 }
  0x4a   : > { %2053 = vmatprep.subr.bf16.mxu0 %v2406_v40 }
  0x4d   : > { %2054 = vmatpush3.bf16.msra.mxu0 %v2407_v41 }
  0x4e   : > { %2055 = vmatprep.subr.bf16.mxu0 %v2408_v42 }
  0x4f   : > { %2264 = vmatmul.mubr.bf16.gmra.mrb[12].mxu0 %v2387_v43  ;;  %2280 = vmatmul.mubr.bf16.gmra.mrb[12].mxu1 %v2395_v44 }
  0x50   : > { %2299 = vmatprep.mubr.bf16.mxu1 %v2412_v48  ;;  %v2414_v48 = vld [vmem:[%s3067_s1 + $0x10] sm:$0xff]  }
  0x51   : > { %2056 = vmatpush3.bf16.msra.mxu0 %v2409_v45 }
  0x52   : > { %2057 = vmatprep.subr.bf16.mxu0 %v2410_v46 }
  0x55   : > { %2058 = vmatpush3.bf16.msra.mxu0 %v2411_v47  ;;  %v2413_v47 = vld [vmem:[%s3067_s1 + $0x8] sm:$0xff]  }
  0x56   : > { %2171 = vmatprep.subr.bf16.mxu0 %v2430_v49  ;;  %v2415_v49 = vld [vmem:[%s3067_s1 + $0x18] sm:$0xff]  }
 0x10a   : > { %v2253_v50 = vpop.f32.mrb[0].mxu0  ;;  %v2269_v51 = vpop.f32.mrb[0].mxu1 }
 0x10b   : > { %v444_v52 = vpop.f32.mrb[1].mxu0  ;;  %v508_v53 = vpop.f32.mrb[1].mxu1 }
 0x10c   : > { %v2254_v54 = vpop.f32.mrb[2].mxu0  ;;  %v2270_v55 = vpop.f32.mrb[2].mxu1 }
 0x10d   : > { %v572_v56 = vpack.c.bf16 %v2254_v54, %v2253_v50  ;;  %v447_v57 = vpop.f32.mrb[3].mxu0  ;;  %v2665_v58 = vpack.c.bf16 %v2270_v55, %v2269_v51  ;;  %v511_v59 = vpop.f32.mrb[3].mxu1  ;;  %v2416_v50 = vld [vmem:[%s3067_s1 + $0x20] sm:$0xff]   ;;  %v2417_v51 = vld [vmem:[%s3067_s1 + $0x28] sm:$0xff]  }
 0x10e   : > { %v571_v60 = vpack.c.bf16 %v447_v57, %v444_v52  ;;  %v2667_v61 = vpack.c.bf16 %v511_v59, %v508_v53  ;;  %v2418_v52 = vld [vmem:[%s3067_s1 + $0x30] sm:$0xff]   ;;  %v2419_v53 = vld [vmem:[%s3067_s1 + $0x38] sm:$0xff]   ;;  %v2420_v54 = vld [vmem:[%s3067_s1 + $0x40] sm:$0xff]  }
 0x10f   : > { %v2428_v55 = vld [vmem:[%s2522_s24 + $0xc0] sm:$0xff]   ;;  %v2422_v57 = vld [vmem:[%s3067_s1 + $0x50] sm:$0xff]  }
 0x110   : > { %2283 = vmatprep.subr.bf16.mxu1 %v571_v60  ;;  %1525 = vmatprep.mubr.bf16.mxu0 %v571_v60  ;;  %v2429_v59 = vld [vmem:[%s2522_s24 + $0x80] sm:$0xff]  }
 0x111   : > { %2284 = vmatpush3.bf16.msra.mxu1 %v571_v60  ;;  %1526 = vmatmul.mubr.bf16.vlgmr.msra.gmra.mrb[16].mxu0 %v2549_v8  ;;  %v2432_v60 = vld [vmem:[%s2522_s24 + $0xc8] sm:$0xff]  }
 0x112   : > { %v2257_v0 = vpop.f32.mrb[4].mxu0  ;;  %2285 = vmatprep.subr.bf16.mxu1 %v572_v56  ;;  %1533 = vmatprep.mubr.bf16.mxu0 %v572_v56  ;;  %v2273_v1 = vpop.f32.mrb[4].mxu1 }
 0x113   : > { %v460_v2 = vpop.f32.mrb[5].mxu0  ;;  %v524_v3 = vpop.f32.mrb[5].mxu1  ;;  %2172 = vmatpush3.bf16.msra.mxu0 %v2431_v62  ;;  %v2433_v62 = vld [vmem:[%s2522_s24 + $0x88] sm:$0xff]  }
 0x114   : > { %v2258_v5 = vpop.f32.mrb[6].mxu0  ;;  %v2274_v6 = vpop.f32.mrb[6].mxu1  ;;  %2173 = vmatprep.subr.bf16.mxu0 %v2436_v63  ;;  %v2434_v63 = vld [vmem:[%s2522_s24 + $0xd0] sm:$0xff]  }
 0x115   : > { %v574_v10 = vpack.c.bf16 %v2258_v5, %v2257_v0  ;;  %v463_v13 = vpop.f32.mrb[7].mxu0  ;;  %2286 = vmatpush3.bf16.msra.mxu1 %v572_v56  ;;  %v2674_v18 = vpack.c.bf16 %v2274_v6, %v2273_v1  ;;  %v527_v19 = vpop.f32.mrb[7].mxu1  ;;  %v2421_v56 = vld [vmem:[%s3067_s1 + $0x48] sm:$0xff]   ;;  %v2423_v0 = vld [vmem:[%s3067_s1 + $0x58] sm:$0xff]   ;;  %v2424_v1 = vld [vmem:[%s3067_s1 + $0x60] sm:$0xff]  }
 0x116   : > { %v573_v20 = vpack.c.bf16 %v463_v13, %v460_v2  ;;  %v2676_v21 = vpack.c.bf16 %v527_v19, %v524_v3  ;;  %v2435_v2 = vld [vmem:[%s2522_s24 + $0x90] sm:$0xff]   ;;  %v2438_v3 = vld [vmem:[%s2522_s24 + $0xd8] sm:$0xff]   ;;  %v2440_v5 = vld [vmem:[%s2522_s24 + $0xe0] sm:$0xff]  }
 0x117   : > { %2174 = vmatpush3.bf16.msra.mxu0 %v2437_v4  ;;  %v2439_v4 = vld [vmem:[%s2522_s24 + $0x98] sm:$0xff]   ;;  %v2425_v6 = vld [vmem:[%s3067_s1 + $0x68] sm:$0xff]  }
 0x118   : > { %2287 = vmatprep.subr.bf16.mxu1 %v573_v20  ;;  %2175 = vmatprep.subr.bf16.mxu0 %v2442_v7  ;;  %v2426_v7 = vld [vmem:[%s3067_s1 + $0x70] sm:$0xff]   ;;  %v2444_v13 = vld [vmem:[%s2522_s24 + $0xe8] sm:$0xff]  }
 0x119   : > { %2288 = vmatpush3.bf16.msra.mxu1 %v573_v20  ;;  %1534 = vmatmul.mubr.bf16.gmra.mrb[20].mxu0 %v2551_v9  ;;  %v2445_v19 = vld [vmem:[%s2522_s24 + $0xa8] sm:$0xff]  }
 0x11a   : > { %v2261_v23 = vpop.f32.mrb[8].mxu0  ;;  %2289 = vmatprep.subr.bf16.mxu1 %v574_v10  ;;  %1541 = vmatprep.mubr.bf16.mxu0 %v573_v20  ;;  %v2277_v24 = vpop.f32.mrb[8].mxu1  ;;  %v2427_v20 = vld [vmem:[%s3067_s1 + $0x78] sm:$0xff]  }
 0x11b   : > { %v476_v25 = vpop.f32.mrb[9].mxu0  ;;  %v540_v26 = vpop.f32.mrb[9].mxu1  ;;  %2176 = vmatpush3.bf16.msra.mxu0 %v2443_v22  ;;  %v2446_v22 = vld [vmem:[%s2522_s24 + $0xf0] sm:$0xff]  }
 0x11c   : > { %v2262_v27 = vpop.f32.mrb[10].mxu0  ;;  %v2278_v28 = vpop.f32.mrb[10].mxu1 }
 0x11d   : > { %v576_v29 = vpack.c.bf16 %v2262_v27, %v2261_v23  ;;  %v479_v30 = vpop.f32.mrb[11].mxu0  ;;  %2290 = vmatpush3.bf16.msra.mxu1 %v574_v10  ;;  %v2680_v31 = vpack.c.bf16 %v2278_v28, %v2277_v24  ;;  %v543_v32 = vpop.f32.mrb[11].mxu1  ;;  %v2447_v23 = vld [vmem:[%s2522_s24 + $0xb0] sm:$0xff]   ;;  %v2450_v24 = vld [vmem:[%s2522_s24 + $0xf8] sm:$0xff]   ;;  %v2452_v28 = vld [vmem:[%s2522_s24 + $0x160] sm:$0xff]  }
 0x11e   : > { %v575_v33 = vpack.c.bf16 %v479_v30, %v476_v25  ;;  %v2682_v34 = vpack.c.bf16 %v543_v32, %v540_v26  ;;  %v2451_v25 = vld [vmem:[%s2522_s24 + $0xb8] sm:$0xff]   ;;  %v2454_v30 = vld [vmem:[%s2522_s24 + $0x168] sm:$0xff]  }
 0x11f   : > { %v2448_v26 = vld [vmem:[%s2522_s24 + $0x158] sm:$0xff]   ;;  %v2455_v32 = vld [vmem:[%s2522_s24 + $0x128] sm:$0xff]  }
 0x120   : > { %2291 = vmatprep.subr.bf16.mxu1 %v575_v33  ;;  %v2449_v27 = vld [vmem:[%s2522_s24 + $0x118] sm:$0xff]   ;;  %2177 = vmatprep.subr.bf16.mxu0 %v2448_v26 }
 0x121   : > { %2292 = vmatpush3.bf16.msra.mxu1 %v575_v33  ;;  %1542 = vmatmul.mubr.bf16.gmra.mrb[24].mxu0 %v2562_v11 }
 0x122   : > { %v2265_v35 = vpop.f32.mrb[12].mxu0  ;;  %2293 = vmatprep.subr.bf16.mxu1 %v576_v29  ;;  %1549 = vmatprep.mubr.bf16.mxu0 %v574_v10  ;;  %v2281_v36 = vpop.f32.mrb[12].mxu1  ;;  %v2441_v10 = vld [vmem:[%s2522_s24 + $0xa0] sm:$0xff]  }
 0x123   : > { %v492_v37 = vpop.f32.mrb[13].mxu0  ;;  %v556_v38 = vpop.f32.mrb[13].mxu1  ;;  %2178 = vmatpush3.bf16.msra.mxu0 %v2449_v27 }
 0x124   : > { %v2266_v39 = vpop.f32.mrb[14].mxu0  ;;  %v2282_v40 = vpop.f32.mrb[14].mxu1  ;;  %2179 = vmatprep.subr.bf16.mxu0 %v2452_v28 }
 0x125   : > { %v578_v41 = vpack.c.bf16 %v2266_v39, %v2265_v35  ;;  %v495_v42 = vpop.f32.mrb[15].mxu0  ;;  %2294 = vmatpush3.bf16.msra.mxu1 %v576_v29  ;;  %v2685_v43 = vpack.c.bf16 %v2282_v40, %v2281_v36  ;;  %v559_v44 = vpop.f32.mrb[15].mxu1  ;;  %v2457_v35 = vld [vmem:[%s2522_s24 + $0x130] sm:$0xff]   ;;  %v2458_v36 = vld [vmem:[%s2522_s24 + $0x178] sm:$0xff]  }
 0x126   : > { %v577_v45 = vpack.c.bf16 %v495_v42, %v492_v37  ;;  %v2687_v46 = vpack.c.bf16 %v559_v44, %v556_v38  ;;  %v2459_v37 = vld [vmem:[%s2522_s24 + $0x138] sm:$0xff]  }
 0x128   : > { %2295 = vmatprep.subr.bf16.mxu1 %v577_v45 }
 0x129   : > { %2296 = vmatpush3.bf16.msra.mxu1 %v577_v45  ;;  %1550 = vmatmul.mubr.bf16.gmra.mrb[28].mxu0 %v2568_v12 }
 0x12a   : > { %2297 = vmatprep.subr.bf16.mxu1 %v578_v41  ;;  %1557 = vmatprep.mubr.bf16.mxu0 %v575_v33  ;;  %v2456_v33 = vld [vmem:[%s2522_s24 + $0x170] sm:$0xff]  }
 0x12d   : > { %2298 = vmatpush3.bf16.msra.mxu1 %v578_v41 }
 0x12e   : > { %2315 = vmatprep.subr.bf16.mxu1 %v2667_v61 }
 0x130   : > { %2300 = vmatmul.mubr.bf16.vlgmr.msra.gmra.mrb[16].mxu1 %v2413_v47 }
 0x131   : > { %2316 = vmatpush3.bf16.msra.mxu1 %v2667_v61  ;;  %1558 = vmatmul.mubr.bf16.gmra.mrb[32].mxu0 %v2577_v14 }
 0x132   : > { %2317 = vmatprep.subr.bf16.mxu1 %v2665_v58  ;;  %1565 = vmatprep.mubr.bf16.mxu0 %v576_v29  ;;  %v2453_v29 = vld [vmem:[%s2522_s24 + $0x120] sm:$0xff]  }
 0x133   : > { %2303 = vmatprep.mubr.bf16.mxu1 %v2414_v48  ;;  %2180 = vmatpush3.bf16.msra.mxu0 %v2453_v29 }
 0x134   : > { %2181 = vmatprep.subr.bf16.mxu0 %v2454_v30 }
 0x135   : > { %2318 = vmatpush3.bf16.msra.mxu1 %v2665_v58 }
 0x136   : > { %2319 = vmatprep.subr.bf16.mxu1 %v2676_v21 }
 0x137   : > { %2182 = vmatpush3.bf16.msra.mxu0 %v2455_v32 }
 0x138   : > { %2304 = vmatmul.mubr.bf16.gmra.mrb[20].mxu1 %v2415_v49  ;;  %2183 = vmatprep.subr.bf16.mxu0 %v2456_v33 }
 0x139   : > { %2320 = vmatpush3.bf16.msra.mxu1 %v2676_v21  ;;  %1566 = vmatmul.mubr.bf16.gmra.mrb[36].mxu0 %v2583_v15 }
 0x13a   : > { %2321 = vmatprep.subr.bf16.mxu1 %v2674_v18  ;;  %1573 = vmatprep.mubr.bf16.mxu0 %v577_v45 }
 0x13b   : > { %2307 = vmatprep.mubr.bf16.mxu1 %v2416_v50  ;;  %2184 = vmatpush3.bf16.msra.mxu0 %v2457_v35 }
 0x13c   : > { %2185 = vmatprep.subr.bf16.mxu0 %v2458_v36  ;;  %v593_v36 = vunpack.c.l.bf16 %v2568_v12 }
 0x13d   : > { %2322 = vmatpush3.bf16.msra.mxu1 %v2674_v18 }
 0x13e   : > { %2323 = vmatprep.subr.bf16.mxu1 %v2682_v34 }
 0x13f   : > { %2186 = vmatpush3.bf16.msra.mxu0 %v2459_v37 }
 0x140   : > { %2308 = vmatmul.mubr.bf16.gmra.mrb[24].mxu1 %v2417_v51 }
 0x141   : > { %2324 = vmatpush3.bf16.msra.mxu1 %v2682_v34  ;;  %1574 = vmatmul.mubr.bf16.gmra.mrb[40].mxu0 %v2589_v16 }
 0x142   : > { %2325 = vmatprep.subr.bf16.mxu1 %v2680_v31  ;;  %1581 = vmatprep.mubr.bf16.mxu0 %v578_v41 }
 0x143   : > { %2311 = vmatprep.mubr.bf16.mxu1 %v2418_v52 }
 0x145   : > { %2326 = vmatpush3.bf16.msra.mxu1 %v2680_v31 }
 0x146   : > { %2327 = vmatprep.subr.bf16.mxu1 %v2687_v46 }
 0x148   : > { %2312 = vmatmul.mubr.bf16.gmra.mrb[28].mxu1 %v2419_v53 }
 0x149   : > { %2328 = vmatpush3.bf16.msra.mxu1 %v2687_v46  ;;  %2331 = vmatprep.mubr.bf16.mxu1 %v2420_v54 }
 0x14a   : > { %2329 = vmatprep.subr.bf16.mxu1 %v2685_v43  ;;  %1582 = vmatmul.mubr.bf16.gmra.mrb[44].mxu0 %v2595_v17 }
 0x14d   : > { %2330 = vmatpush3.bf16.msra.mxu1 %v2685_v43 }
 0x14e   : > { %2107 = vmatprep.subr.bf16.mxu1 %v2428_v55 }
 0x150   : > { %2332 = vmatmul.mubr.bf16.vlgmr.msra.gmra.mrb[32].mxu1 %v2421_v56 }
 0x151   : > { %2335 = vmatprep.mubr.bf16.mxu1 %v2422_v57  ;;  %2108 = vmatpush3.bf16.msra.mxu1 %v2429_v59 }
 0x152   : > { %2109 = vmatprep.subr.bf16.mxu1 %v2432_v60 }
 0x155   : > { %2110 = vmatpush3.bf16.msra.mxu1 %v2433_v62 }
 0x156   : > { %2111 = vmatprep.subr.bf16.mxu1 %v2434_v63 }
 0x158   : > { %2336 = vmatmul.mubr.bf16.gmra.mrb[36].mxu1 %v2423_v0 }
 0x159   : > { %2339 = vmatprep.mubr.bf16.mxu1 %v2424_v1  ;;  %2112 = vmatpush3.bf16.msra.mxu1 %v2435_v2 }
 0x15a   : > { %2113 = vmatprep.subr.bf16.mxu1 %v2438_v3  ;;  %v589_v3 = vunpack.c.l.bf16 %v2551_v9 }
 0x15d   : > { %2114 = vmatpush3.bf16.msra.mxu1 %v2439_v4 }
 0x15e   : > { %2115 = vmatprep.subr.bf16.mxu1 %v2440_v5 }
 0x160   : > { %2340 = vmatmul.mubr.bf16.gmra.mrb[40].mxu1 %v2425_v6  ;;  %v590_v6 = vunpack.c.h.bf16 %v2551_v9 }
 0x161   : > { %2343 = vmatprep.mubr.bf16.mxu1 %v2426_v7  ;;  %2116 = vmatpush3.bf16.msra.mxu1 %v2441_v10  ;;  %v587_v10 = vunpack.c.l.bf16 %v2549_v8 }
 0x162   : > { %2117 = vmatprep.subr.bf16.mxu1 %v2444_v13 }
 0x165   : > { %2118 = vmatpush3.bf16.msra.mxu1 %v2445_v19 }
 0x166   : > { %2119 = vmatprep.subr.bf16.mxu1 %v2446_v22 }
 0x168   : > { %2344 = vmatmul.mubr.bf16.gmra.mrb[44].mxu1 %v2427_v20  ;;  %v588_v20 = vunpack.c.h.bf16 %v2549_v8 }
 0x169   : > { %1622 = vmatprep.mubr.bf16.mxu1 %v2549_v8  ;;  %2120 = vmatpush3.bf16.msra.mxu1 %v2447_v23 }
 0x16a   : > { %2121 = vmatprep.subr.bf16.mxu1 %v2450_v24 }
 0x16d   : > { %2122 = vmatpush3.bf16.msra.mxu1 %v2451_v25 }
 0x1e4   : > { %v2059_v38 = vpop.f32.mrb[16].mxu0 }
 0x1e5   : > { %v2060_v39 = vpop.f32.mrb[17].mxu0 }
 0x1e6   : > { %v2782_v40 = vadd.f32 %v2060_v39, %v2059_v38  ;;  %v2062_v41 = vpop.f32.mrb[18].mxu0  ;;  %v594_v39 = vunpack.c.h.bf16 %v2568_v12 }
 0x1e7   : > { %v2063_v42 = vpop.f32.mrb[19].mxu0 }
 0x1e8   : > { %v2784_v44 = vadd.f32 %v2063_v42, %v2062_v41  ;;  %v591_v41 = vunpack.c.l.bf16 %v2562_v11 }
 0x1ec   : > { %v2065_v45 = vpop.f32.mrb[20].mxu0 }
 0x1ed   : > { %v2066_v47 = vpop.f32.mrb[21].mxu0 }
 0x1ee   : > { %v2786_v48 = vadd.f32 %v2066_v47, %v2065_v45  ;;  %v2068_v49 = vpop.f32.mrb[22].mxu0  ;;  %v592_v47 = vunpack.c.h.bf16 %v2562_v11 }
 0x1ef   : > { %v2069_v50 = vpop.f32.mrb[23].mxu0 }
 0x1f0   : > { %v2788_v51 = vadd.f32 %v2069_v50, %v2068_v49 }
 0x1f4   : > { %v2071_v52 = vpop.f32.mrb[24].mxu0 }
 0x1f5   : > { %v2072_v53 = vpop.f32.mrb[25].mxu0 }
 0x1f6   : > { %v2790_v54 = vadd.f32 %v2072_v53, %v2071_v52  ;;  %v2074_v55 = vpop.f32.mrb[26].mxu0  ;;  %v2460_v52 = vld [vmem:[#allocation2 + $0x8] sm:$0xff] }
 0x1f7   : > { %v2075_v56 = vpop.f32.mrb[27].mxu0 }
 0x1f8   : > { %v2792_v57 = vadd.f32 %v2075_v56, %v2074_v55 }
 0x1fc   : > { %v2077_v59 = vpop.f32.mrb[28].mxu0 }
 0x1fd   : > { %v2078_v60 = vpop.f32.mrb[29].mxu0 }
 0x1fe   : > { %v2794_v62 = vadd.f32 %v2078_v60, %v2077_v59  ;;  %v2080_v63 = vpop.f32.mrb[30].mxu0 }
 0x1ff   : > { %v2081_v0 = vpop.f32.mrb[31].mxu0 }
 0x200   : > { %v2796_v1 = vadd.f32 %v2081_v0, %v2080_v63 }
 0x203   : > { %v2301_v2 = vpop.f32.mrb[16].mxu1 }
 0x204   : > { %v782_v4 = vmul.f32 2.0, %v2301_v2  ;;  %v717_v5 = vpop.f32.mrb[17].mxu1  ;;  %v2083_v7 = vpop.f32.mrb[32].mxu0 }
 0x205   : > { %v780_v13 = vmul.f32 2.0, %v717_v5  ;;  %v2302_v19 = vpop.f32.mrb[18].mxu1  ;;  %v2084_v22 = vpop.f32.mrb[33].mxu0 }
 0x206   : > { %v783_v23 = vmul.f32 2.0, %v2302_v19  ;;  %v720_v24 = vpop.f32.mrb[19].mxu1  ;;  %v2802_v25 = vadd.f32 %v2084_v22, %v2083_v7  ;;  %v798_v27 = vsub.f32 %v782_v4, %v589_v3  ;;  %v597_v4 = vunpack.c.l.bf16 %v2583_v15 }
 0x207   : > { %v781_v26 = vmul.f32 2.0, %v720_v24  ;;  %v796_v29 = vsub.f32 %v780_v13, %v587_v10  ;;  %v598_v13 = vunpack.c.h.bf16 %v2583_v15  ;;  %v595_v19 = vunpack.c.l.bf16 %v2577_v14 }
 0x208   : > { %v799_v28 = vsub.f32 %v783_v23, %v590_v6  ;;  %v596_v24 = vunpack.c.h.bf16 %v2577_v14 }
 0x209   : > { %v797_v30 = vsub.f32 %v781_v26, %v588_v20 }
 0x20a   : > { %v813_v32 = vpack.c.bf16 %v799_v28, %v798_v27  ;;  %v2461_v28 = vld [vmem:[#allocation2 + $0x10] sm:$0xff] }
 0x20b   : > { %v812_v33 = vpack.c.bf16 %v797_v30, %v796_v29  ;;  %v2305_v35 = vpop.f32.mrb[20].mxu1 }
 0x20c   : > { %v786_v37 = vmul.f32 2.0, %v2305_v35  ;;  %v733_v38 = vpop.f32.mrb[21].mxu1 }
 0x20d   : > { %v784_v42 = vmul.f32 2.0, %v733_v38  ;;  %v2306_v45 = vpop.f32.mrb[22].mxu1  ;;  %1623 = vmatmul.mubr.bf16.vlgmr.msra.gmra.mrb[48].mxu1 %v812_v33 }
 0x20e   : > { %v787_v49 = vmul.f32 2.0, %v2306_v45  ;;  %v736_v50 = vpop.f32.mrb[23].mxu1  ;;  %1630 = vmatprep.mubr.bf16.mxu1 %v2460_v52  ;;  %v802_v55 = vsub.f32 %v786_v37, %v593_v36  ;;  %v601_v45 = vunpack.c.l.bf16 %v2595_v17  ;;  %v602_v52 = vunpack.c.h.bf16 %v2595_v17 }
 0x20f   : > { %v785_v53 = vmul.f32 2.0, %v736_v50  ;;  %v800_v59 = vsub.f32 %v784_v42, %v591_v41 }
 0x210   : > { %v803_v56 = vsub.f32 %v787_v49, %v594_v39 }
 0x211   : > { %v801_v60 = vsub.f32 %v785_v53, %v592_v47  ;;  %v599_v53 = vunpack.c.l.bf16 %v2589_v16 }
 0x212   : > { %v815_v63 = vpack.c.bf16 %v803_v56, %v802_v55 }
 0x213   : > { %v2309_v0 = vpop.f32.mrb[24].mxu1  ;;  %v814_v2 = vpack.c.bf16 %v801_v60, %v800_v59  ;;  %v600_v59 = vunpack.c.h.bf16 %v2589_v16  ;;  %v2086_v16 = vpop.f32.mrb[34].mxu0 }
 0x214   : > { %v790_v5 = vmul.f32 2.0, %v2309_v0  ;;  %v749_v7 = vpop.f32.mrb[25].mxu1  ;;  %v2087_v17 = vpop.f32.mrb[35].mxu0 }
 0x215   : > { %v788_v22 = vmul.f32 2.0, %v749_v7  ;;  %v2310_v23 = vpop.f32.mrb[26].mxu1  ;;  %1631 = vmatmul.mubr.bf16.gmra.mrb[52].mxu1 %v813_v32 }
 0x216   : > { %v791_v26 = vmul.f32 2.0, %v2310_v23  ;;  %v752_v27 = vpop.f32.mrb[27].mxu1  ;;  %1638 = vmatprep.mubr.bf16.mxu1 %v2461_v28  ;;  %v2830_v30 = vsub.f32 %v790_v5, %v597_v4  ;;  %v2462_v5 = vld [vmem:[#allocation2 + $0x18] sm:$0xff] }
 0x217   : > { %v789_v29 = vmul.f32 2.0, %v752_v27  ;;  %v804_v35 = vsub.f32 %v788_v22, %v595_v19 }
 0x218   : > { %v2834_v33 = vsub.f32 %v791_v26, %v598_v13 }
 0x219   : > { %v805_v32 = vsub.f32 %v789_v29, %v596_v24 }
 0x21a   : > { %v817_v37 = vpack.c.bf16 %v2834_v33, %v2830_v30 }
 0x21b   : > { %v2313_v38 = vpop.f32.mrb[28].mxu1  ;;  %v816_v42 = vpack.c.bf16 %v805_v32, %v804_v35 }
 0x21c   : > { %v794_v49 = vmul.f32 2.0, %v2313_v38  ;;  %v765_v50 = vpop.f32.mrb[29].mxu1 }
 0x21d   : > { %v792_v55 = vmul.f32 2.0, %v765_v50  ;;  %v2314_v56 = vpop.f32.mrb[30].mxu1  ;;  %1639 = vmatmul.mubr.bf16.gmra.mrb[56].mxu1 %v814_v2  ;;  %v2463_v50 = vld [vmem:[#allocation2 + $0x20] sm:$0xff] }
 0x21e   : > { %v795_v60 = vmul.f32 2.0, %v2314_v56  ;;  %v768_v0 = vpop.f32.mrb[31].mxu1  ;;  %1646 = vmatprep.mubr.bf16.mxu1 %v2462_v5  ;;  %v2848_v22 = vsub.f32 %v794_v49, %v601_v45 }
 0x21f   : > { %v793_v7 = vmul.f32 2.0, %v768_v0  ;;  %v2856_v26 = vsub.f32 %v792_v55, %v599_v53 }
 0x220   : > { %v2852_v23 = vsub.f32 %v795_v60, %v602_v52 }
 0x221   : > { %v809_v2 = vsub.f32 %v793_v7, %v600_v59 }
 0x222   : > { %v819_v27 = vpack.c.bf16 %v2852_v23, %v2848_v22 }
 0x223   : > { %v2333_v28 = vpop.f32.mrb[32].mxu1  ;;  %v818_v29 = vpack.c.bf16 %v809_v2, %v2856_v26 }
 0x224   : > { %v1008_v30 = vmul.f32 2.0, %v2333_v28  ;;  %v943_v33 = vpop.f32.mrb[33].mxu1 }
 0x225   : > { %v1006_v35 = vmul.f32 2.0, %v943_v33  ;;  %v2334_v32 = vpop.f32.mrb[34].mxu1  ;;  %1647 = vmatmul.mubr.bf16.gmra.mrb[60].mxu1 %v815_v63 }
 0x226   : > { %v1009_v38 = vmul.f32 2.0, %v2334_v32  ;;  %v946_v49 = vpop.f32.mrb[35].mxu1  ;;  %1654 = vmatprep.mubr.bf16.mxu1 %v2463_v50  ;;  %v1024_v56 = vsub.f32 %v1008_v30, %v589_v3 }
 0x227   : > { %v1007_v55 = vmul.f32 2.0, %v946_v49  ;;  %v1022_v0 = vsub.f32 %v1006_v35, %v587_v10  ;;  %v2464_v10 = vld [vmem:[#allocation2 + $0x28] sm:$0xff] }
 0x228   : > { %v1025_v60 = vsub.f32 %v1009_v38, %v590_v6 }
 0x229   : > { %v1023_v5 = vsub.f32 %v1007_v55, %v588_v20 }
 0x22a   : > { %v1039_v7 = vpack.c.bf16 %v1025_v60, %v1024_v56  ;;  %v2465_v56 = vld [vmem:[#allocation2 + $0x30] sm:$0xff] }
 0x22b   : > { %v1038_v26 = vpack.c.bf16 %v1023_v5, %v1022_v0  ;;  %v2337_v63 = vpop.f32.mrb[36].mxu1 }
 0x22c   : > { %v1012_v2 = vmul.f32 2.0, %v2337_v63  ;;  %v959_v28 = vpop.f32.mrb[37].mxu1 }
 0x22d   : > { %1655 = vmatmul.mubr.bf16.gmra.mrb[64].mxu1 %v816_v42  ;;  %1719 = vmatprep.mubr.bf16.mxu0 %v1038_v26  ;;  %v1010_v33 = vmul.f32 2.0, %v959_v28  ;;  %v2338_v32 = vpop.f32.mrb[38].mxu1 }
 0x22e   : > { %1720 = vmatmul.mubr.bf16.vlgmr.msra.gmra.mrb[48].mxu0 %v2667_v61  ;;  %v1028_v9 = vsub.f32 %v1012_v2, %v593_v36  ;;  %v1013_v3 = vmul.f32 2.0, %v2338_v32  ;;  %v962_v6 = vpop.f32.mrb[39].mxu1  ;;  %1662 = vmatprep.mubr.bf16.mxu1 %v2464_v10  ;;  %v2466_v2 = vld [vmem:[#allocation2 + $0x38] sm:$0xff] }
 0x22f   : > { %1727 = vmatprep.mubr.bf16.mxu0 %v1039_v7  ;;  %v1026_v8 = vsub.f32 %v1010_v33, %v591_v41  ;;  %v1011_v20 = vmul.f32 2.0, %v962_v6 }
 0x230   : > { %v1029_v42 = vsub.f32 %v1013_v3, %v594_v39 }
 0x231   : > { %v1027_v30 = vsub.f32 %v1011_v20, %v592_v47 }
 0x232   : > { %v1041_v35 = vpack.c.bf16 %v1029_v42, %v1028_v9  ;;  %v2925_v42 = vld [vmem:[%s196_s21] ss:$0 sm:$0xff] }
 0x233   : > { %v1040_v61 = vpack.c.bf16 %v1027_v30, %v1026_v8  ;;  %v2341_v38 = vpop.f32.mrb[40].mxu1 }
 0x234   : > { %v1016_v49 = vmul.f32 2.0, %v2341_v38  ;;  %v975_v36 = vpop.f32.mrb[41].mxu1 }
 0x235   : > { %1663 = vmatmul.mubr.bf16.gmra.mrb[68].mxu1 %v817_v37  ;;  %v1014_v50 = vmul.f32 2.0, %v975_v36  ;;  %v2342_v55 = vpop.f32.mrb[42].mxu1 }
 0x236   : > { %1728 = vmatmul.mubr.bf16.gmra.mrb[52].mxu0 %v2665_v58  ;;  %1670 = vmatprep.mubr.bf16.mxu1 %v2465_v56  ;;  %v1032_v41 = vsub.f32 %v1016_v49, %v597_v4  ;;  %v1017_v12 = vmul.f32 2.0, %v2342_v55  ;;  %v978_v39 = vpop.f32.mrb[43].mxu1 }
 0x237   : > { %1735 = vmatprep.mubr.bf16.mxu0 %v1040_v61  ;;  %v1030_v11 = vsub.f32 %v1014_v50, %v595_v19  ;;  %v1015_v47 = vmul.f32 2.0, %v978_v39  ;;  %v1528_v61 = vadd.f32 %v2782_v40, %v2925_v42  ;;  %v1531_v50 = vadd.f32 %v2784_v44, %v2925_v42 }
 0x238   : > { %v1033_v60 = vsub.f32 %v1017_v12, %v598_v13  ;;  %v1539_v40 = vadd.f32 %v2788_v51, %v2925_v42  ;;  %v1544_v44 = vadd.f32 %v2790_v54, %v2925_v42  ;;  %v1555_v54 = vadd.f32 %v2796_v1, %v2925_v42 }
 0x239   : > { %v1031_v37 = vsub.f32 %v1015_v47, %v596_v24 }
 0x23a   : > { %v1043_v0 = vpack.c.bf16 %v1033_v60, %v1032_v41 }
 0x23b   : > { %v1042_v58 = vpack.c.bf16 %v1031_v37, %v1030_v11  ;;  %v2345_v5 = vpop.f32.mrb[44].mxu1  ;;  %v1536_v11 = vadd.f32 %v2786_v48, %v2925_v42  ;;  %v1547_v48 = vadd.f32 %v2792_v57, %v2925_v42 }
 0x23c   : > { %v1020_v7 = vmul.f32 2.0, %v2345_v5  ;;  %v991_v26 = vpop.f32.mrb[45].mxu1 }
 0x23d   : > { %1671 = vmatmul.mubr.bf16.gmra.mrb[72].mxu1 %v818_v29  ;;  %v1018_v4 = vmul.f32 2.0, %v991_v26  ;;  %v2346_v63 = vpop.f32.mrb[46].mxu1 }
 0x23e   : > { %1736 = vmatmul.mubr.bf16.gmra.mrb[56].mxu0 %v2676_v21  ;;  %1678 = vmatprep.mubr.bf16.mxu1 %v2466_v2  ;;  %v1036_v19 = vsub.f32 %v1020_v7, %v601_v45  ;;  %v1021_v15 = vmul.f32 2.0, %v2346_v63  ;;  %v994_v13 = vpop.f32.mrb[47].mxu1  ;;  %v2905_v45 = vadd.f32 %v2087_v17, %v2086_v16 }
 0x23f   : > { %1743 = vmatprep.mubr.bf16.mxu0 %v1041_v35  ;;  %v1034_v14 = vsub.f32 %v1018_v4, %v599_v53  ;;  %v1019_v24 = vmul.f32 2.0, %v994_v13 }
 0x240   : > { %v1037_v28 = vsub.f32 %v1021_v15, %v602_v52  ;;  %v2089_v52 = vpop.f32.mrb[36].mxu0  ;;  %v1563_v1 = vadd.f32 %v2905_v45, %v2925_v42 }
 0x241   : > { %v1035_v29 = vsub.f32 %v1019_v24, %v600_v59  ;;  %v2090_v53 = vpop.f32.mrb[37].mxu0  ;;  %v1552_v24 = vadd.f32 %v2794_v62, %v2925_v42 }
 0x242   : > { %v1045_v33 = vpack.c.bf16 %v1037_v28, %v1036_v19  ;;  %v2908_v59 = vadd.f32 %v2090_v53, %v2089_v52 }
 0x243   : > { %v1044_v21 = vpack.c.bf16 %v1035_v29, %v1034_v14 }
 0x244   : > { %v1568_v45 = vadd.f32 %v2908_v59, %v2925_v42 }
 0x245   : > { %1679 = vmatmul.mubr.bf16.gmra.mrb[76].mxu1 %v819_v27 }
 0x246   : > { %1744 = vmatmul.mubr.bf16.gmra.mrb[60].mxu0 %v2674_v18  ;;  %v2092_v18 = vpop.f32.mrb[38].mxu0 }
 0x247   : > { %1751 = vmatprep.mubr.bf16.mxu0 %v1042_v58 }
 0x24e   : > { %1752 = vmatmul.mubr.bf16.gmra.mrb[64].mxu0 %v2682_v34  ;;  %v2093_v34 = vpop.f32.mrb[39].mxu0 }
 0x24f   : > { %1759 = vmatprep.mubr.bf16.mxu0 %v1043_v0  ;;  %v2910_v22 = vadd.f32 %v2093_v34, %v2092_v18  ;;  %v1560_v18 = vadd.f32 %v2802_v25, %v2925_v42 }
 0x256   : > { %1760 = vmatmul.mubr.bf16.gmra.mrb[68].mxu0 %v2680_v31  ;;  %v2095_v31 = vpop.f32.mrb[40].mxu0 }
 0x257   : > { %1767 = vmatprep.mubr.bf16.mxu0 %v1044_v21  ;;  %v2096_v23 = vpop.f32.mrb[41].mxu0 }
 0x258   : > { %v2912_v27 = vadd.f32 %v2096_v23, %v2095_v31 }
 0x25e   : > { %1768 = vmatmul.mubr.bf16.gmra.mrb[72].mxu0 %v2687_v46  ;;  %v2098_v46 = vpop.f32.mrb[42].mxu0 }
 0x25f   : > { %1775 = vmatprep.mubr.bf16.mxu0 %v1045_v33  ;;  %v2099_v32 = vpop.f32.mrb[43].mxu0 }
 0x260   : > { %v2914_v9 = vadd.f32 %v2099_v32, %v2098_v46  ;;  %v2101_v3 = vpop.f32.mrb[44].mxu0 }
 0x261   : > { %v2102_v6 = vpop.f32.mrb[45].mxu0 }
 0x262   : > { %v2104_v10 = vpop.f32.mrb[46].mxu0 }
 0x263   : > { %v2105_v8 = vpop.f32.mrb[47].mxu0 }
 0x264   : > { %v2918_v20 = vadd.f32 %v2105_v8, %v2104_v10 }
 0x266   : > { %1776 = vmatmul.mubr.bf16.gmra.mrb[76].mxu0 %v2685_v43  ;;  %v2916_v43 = vadd.f32 %v2102_v6, %v2101_v3 }
 0x2e0   : > { %v2123_v30 = vpop.f32.mrb[48].mxu1 }
 0x2e1   : > { %v2124_v35 = vpop.f32.mrb[49].mxu1 }
 0x2e2   : > { %v2125_v38 = vadd.f32 %v2124_v35, %v2123_v30  ;;  %v2126_v49 = vpop.f32.mrb[50].mxu1 }
 0x2e3   : > { %v2127_v36 = vpop.f32.mrb[51].mxu1 }
 0x2e4   : > { %v1625_v55 = vadd.f32 %v2125_v38, %v1528_v61  ;;  %v2128_v56 = vadd.f32 %v2127_v36, %v2126_v49 }
 0x2e6   : > { %v1628_v41 = vadd.f32 %v2128_v56, %v1531_v50 }
 0x2e8   : > { %v2129_v12 = vpop.f32.mrb[52].mxu1 }
 0x2e9   : > { %v2130_v39 = vpop.f32.mrb[53].mxu1 }
 0x2ea   : > { %v2131_v47 = vadd.f32 %v2130_v39, %v2129_v12  ;;  %v2132_v60 = vpop.f32.mrb[54].mxu1 }
 0x2eb   : > { %v2133_v37 = vpop.f32.mrb[55].mxu1 }
 0x2ec   : > { %v1633_v0 = vadd.f32 %v2131_v47, %v1536_v11  ;;  %v2134_v58 = vadd.f32 %v2133_v37, %v2132_v60 }
 0x2ee   : > { %v1636_v5 = vadd.f32 %v2134_v58, %v1539_v40 }
 0x2f0   : > { %v2135_v7 = vpop.f32.mrb[56].mxu1 }
 0x2f1   : > { %v2136_v26 = vpop.f32.mrb[57].mxu1 }
 0x2f2   : > { %v2137_v4 = vadd.f32 %v2136_v26, %v2135_v7  ;;  %v2138_v63 = vpop.f32.mrb[58].mxu1 }
 0x2f3   : > { %v2139_v2 = vpop.f32.mrb[59].mxu1 }
 0x2f4   : > { %v2939_v19 = vadd.f32 %v2137_v4, %v1544_v44  ;;  %v2140_v15 = vadd.f32 %v2139_v2, %v2138_v63 }
 0x2f6   : > { %v2941_v13 = vadd.f32 %v2140_v15, %v1547_v48 }
 0x2f8   : > { %v2141_v51 = vpop.f32.mrb[60].mxu1 }
 0x2f9   : > { %v2142_v14 = vpop.f32.mrb[61].mxu1 }
 0x2fa   : > { %v2143_v28 = vadd.f32 %v2142_v14, %v2141_v51  ;;  %v2144_v29 = vpop.f32.mrb[62].mxu1 }
 0x2fb   : > { %v2145_v33 = vpop.f32.mrb[63].mxu1 }
 0x2fc   : > { %v2947_v21 = vadd.f32 %v2143_v28, %v1552_v24  ;;  %v2146_v16 = vadd.f32 %v2145_v33, %v2144_v29 }
 0x2fe   : > { %v2949_v57 = vadd.f32 %v2146_v16, %v1555_v54 }
 0x300   : > { %v2147_v17 = vpop.f32.mrb[64].mxu1 }
 0x301   : > { %v2148_v52 = vpop.f32.mrb[65].mxu1  ;;  %v2187_v53 = vpop.f32.mrb[48].mxu0 }
 0x302   : > { %v2149_v34 = vadd.f32 %v2148_v52, %v2147_v17  ;;  %v2150_v31 = vpop.f32.mrb[66].mxu1  ;;  %v2188_v62 = vpop.f32.mrb[49].mxu0 }
 0x303   : > { %v2189_v23 = vadd.f32 %v2188_v62, %v2187_v53  ;;  %v2151_v46 = vpop.f32.mrb[67].mxu1  ;;  %v2190_v32 = vpop.f32.mrb[50].mxu0 }
 0x304   : > { %v2955_v3 = vadd.f32 %v2149_v34, %v1560_v18  ;;  %v2152_v6 = vadd.f32 %v2151_v46, %v2150_v31  ;;  %v2191_v10 = vpop.f32.mrb[51].mxu0  ;;  %v1584_v46 = vadd.f32 %v2916_v43, %v2925_v42 }
 0x305   : > { %v2957_v8 = vadd.f32 %v2189_v23, %v1625_v55  ;;  %v2192_v30 = vadd.f32 %v2191_v10, %v2190_v32 }
 0x306   : > { %v2959_v35 = vadd.f32 %v2152_v6, %v1563_v1 }
 0x307   : > { %v2961_v61 = vadd.f32 %v2192_v30, %v1628_v41  ;;  %v1784_v38 = vmax.f32 %v2957_v8, 0.0  ;;  %v1571_v41 = vadd.f32 %v2910_v22, %v2925_v42  ;;  %v1576_v22 = vadd.f32 %v2912_v27, %v2925_v42  ;;  %1820 = vst [vmem:[%s3070_s4] sm:$0xff] (!%p1984_p5), %v2957_v8 }
 0x308   : > { %v2153_v25 = vpop.f32.mrb[68].mxu1 }
 0x309   : > { %v1785_v49 = vmax.f32 %v2961_v61, 0.0  ;;  %v2154_v36 = vpop.f32.mrb[69].mxu1  ;;  %v2193_v50 = vpop.f32.mrb[52].mxu0  ;;  %1821 = vst [vmem:[%s3070_s4 + $0x8] sm:$0xff] (!%p1984_p5), %v2961_v61 }
 0x30a   : > { %v2155_v56 = vadd.f32 %v2154_v36, %v2153_v25  ;;  %v2156_v12 = vpop.f32.mrb[70].mxu1  ;;  %v2194_v39 = vpop.f32.mrb[53].mxu0 }
 0x30b   : > { %v1800_v55 = vpack.c.bf16 %v1785_v49, %v1784_v38  ;;  %v2195_v11 = vadd.f32 %v2194_v39, %v2193_v50  ;;  %v2157_v47 = vpop.f32.mrb[71].mxu1  ;;  %v2196_v60 = vpop.f32.mrb[54].mxu0 }
 0x30c   : > { %v2969_v37 = vadd.f32 %v2155_v56, %v1568_v45  ;;  %v2158_v40 = vadd.f32 %v2157_v47, %v2156_v12  ;;  %v2197_v58 = vpop.f32.mrb[55].mxu0 }
 0x30d   : > { %1808 = vst [vmem:[#allocation2] sm:$0xff] %v1800_v55  ;;  %v2971_v7 = vadd.f32 %v2195_v11, %v1633_v0  ;;  %v2198_v26 = vadd.f32 %v2197_v58, %v2196_v60 }
 0x30e   : > { %v2973_v44 = vadd.f32 %v2158_v40, %v1571_v41 }
 0x30f   : > { %v2975_v59 = vadd.f32 %v2198_v26, %v1636_v5  ;;  %v1786_v63 = vmax.f32 %v2971_v7, 0.0  ;;  %v1579_v5 = vadd.f32 %v2914_v9, %v2925_v42  ;;  %1822 = vst [vmem:[%s3070_s4 + $0x10] sm:$0xff] (!%p1984_p5), %v2971_v7 }
 0x310   : > { %v2159_v4 = vpop.f32.mrb[72].mxu1 }
 0x311   : > { %v1787_v2 = vmax.f32 %v2975_v59, 0.0  ;;  %v2160_v48 = vpop.f32.mrb[73].mxu1  ;;  %v2199_v15 = vpop.f32.mrb[56].mxu0  ;;  %1823 = vst [vmem:[%s3070_s4 + $0x18] sm:$0xff] (!%p1984_p5), %v2975_v59 }
 0x312   : > { %v2161_v51 = vadd.f32 %v2160_v48, %v2159_v4  ;;  %v2162_v14 = vpop.f32.mrb[74].mxu1  ;;  %v2200_v24 = vpop.f32.mrb[57].mxu0 }
 0x313   : > { %v1801_v0 = vpack.c.bf16 %v1787_v2, %v1786_v63  ;;  %v2201_v28 = vadd.f32 %v2200_v24, %v2199_v15  ;;  %v2163_v29 = vpop.f32.mrb[75].mxu1  ;;  %v2202_v33 = vpop.f32.mrb[58].mxu0 }
 0x314   : > { %v2983_v54 = vadd.f32 %v2161_v51, %v1576_v22  ;;  %v2164_v16 = vadd.f32 %v2163_v29, %v2162_v14  ;;  %v2203_v17 = vpop.f32.mrb[59].mxu0 }
 0x315   : > { %1809 = vst [vmem:[#allocation2 + $0x8] sm:$0xff] %v1801_v0  ;;  %v2986_v52 = vadd.f32 %v2201_v28, %v2939_v19  ;;  %v2204_v53 = vadd.f32 %v2203_v17, %v2202_v33 }
 0x316   : > { %v1676_v27 = vadd.f32 %v2164_v16, %v1579_v5 }
 0x317   : > { %v2989_v18 = vadd.f32 %v2204_v53, %v2941_v13  ;;  %v1788_v31 = vmax.f32 %v2986_v52, 0.0  ;;  %v1587_v13 = vadd.f32 %v2918_v20, %v2925_v42  ;;  %1824 = vst [vmem:[%s3070_s4 + $0x20] sm:$0xff] (!%p1984_p5), %v2986_v52 }
 0x318   : > { %v2165_v34 = vpop.f32.mrb[76].mxu1 }
 0x319   : > { %v1789_v62 = vmax.f32 %v2989_v18, 0.0  ;;  %v2166_v23 = vpop.f32.mrb[77].mxu1  ;;  %v2205_v9 = vpop.f32.mrb[60].mxu0  ;;  %1825 = vst [vmem:[%s3070_s4 + $0x28] sm:$0xff] (!%p1984_p5), %v2989_v18 }
 0x31a   : > { %v2167_v32 = vadd.f32 %v2166_v23, %v2165_v34  ;;  %v2168_v1 = vpop.f32.mrb[78].mxu1  ;;  %v2206_v6 = vpop.f32.mrb[61].mxu0 }
 0x31b   : > { %v1802_v19 = vpack.c.bf16 %v1789_v62, %v1788_v31  ;;  %v2207_v10 = vadd.f32 %v2206_v6, %v2205_v9  ;;  %v2169_v30 = vpop.f32.mrb[79].mxu1  ;;  %v2208_v25 = vpop.f32.mrb[62].mxu0 }
 0x31c   : > { %v1681_v38 = vadd.f32 %v2167_v32, %v1584_v46  ;;  %v2170_v49 = vadd.f32 %v2169_v30, %v2168_v1  ;;  %v2209_v36 = vpop.f32.mrb[63].mxu0 }
 0x31d   : > { %1810 = vst [vmem:[#allocation2 + $0x10] sm:$0xff] %v1802_v19  ;;  %v2998_v50 = vadd.f32 %v2207_v10, %v2947_v21  ;;  %v2210_v45 = vadd.f32 %v2209_v36, %v2208_v25 }
 0x31e   : > { %v1684_v56 = vadd.f32 %v2170_v49, %v1587_v13 }
 0x31f   : > { %v1749_v43 = vadd.f32 %v2210_v45, %v2949_v57  ;;  %v1790_v12 = vmax.f32 %v2998_v50, 0.0  ;;  %1826 = vst [vmem:[%s3070_s4 + $0x30] sm:$0xff] (!%p1984_p5), %v2998_v50 }
 0x321   : > { %v1791_v39 = vmax.f32 %v1749_v43, 0.0  ;;  %v2211_v55 = vpop.f32.mrb[64].mxu0  ;;  %1827 = vst [vmem:[%s3070_s4 + $0x38] sm:$0xff] (!%p1984_p5), %v1749_v43 }
 0x322   : > { %v2212_v11 = vpop.f32.mrb[65].mxu0 }
 0x323   : > { %v1803_v47 = vpack.c.bf16 %v1791_v39, %v1790_v12  ;;  %v2213_v60 = vadd.f32 %v2212_v11, %v2211_v55  ;;  %v2214_v41 = vpop.f32.mrb[66].mxu0 }
 0x324   : > { %v2215_v20 = vpop.f32.mrb[67].mxu0 }
 0x325   : > { %1811 = vst [vmem:[#allocation2 + $0x18] sm:$0xff] %v1803_v47  ;;  %v1754_v42 = vadd.f32 %v2213_v60, %v2955_v3  ;;  %v2216_v40 = vadd.f32 %v2215_v20, %v2214_v41 }
 0x327   : > { %v1757_v21 = vadd.f32 %v2216_v40, %v2959_v35  ;;  %v1792_v58 = vmax.f32 %v1754_v42, 0.0  ;;  %1828 = vst [vmem:[%s3070_s4 + $0x40] sm:$0xff] (!%p1984_p5), %v1754_v42 }
 0x329   : > { %v1793_v26 = vmax.f32 %v1757_v21, 0.0  ;;  %v2217_v4 = vpop.f32.mrb[68].mxu0  ;;  %1829 = vst [vmem:[%s3070_s4 + $0x48] sm:$0xff] (!%p1984_p5), %v1757_v21 }
 0x32a   : > { %v2218_v63 = vpop.f32.mrb[69].mxu0 }
 0x32b   : > { %v1804_v57 = vpack.c.bf16 %v1793_v26, %v1792_v58  ;;  %v2219_v2 = vadd.f32 %v2218_v63, %v2217_v4  ;;  %v2220_v48 = vpop.f32.mrb[70].mxu0 }
 0x32c   : > { %v2221_v15 = vpop.f32.mrb[71].mxu0 }
 0x32d   : > { %1812 = vst [vmem:[#allocation2 + $0x20] sm:$0xff] %v1804_v57  ;;  %v1762_v22 = vadd.f32 %v2219_v2, %v2969_v37  ;;  %v2222_v51 = vadd.f32 %v2221_v15, %v2220_v48 }
 0x32f   : > { %v1765_v14 = vadd.f32 %v2222_v51, %v2973_v44  ;;  %v1794_v24 = vmax.f32 %v1762_v22, 0.0  ;;  %1830 = vst [vmem:[%s3070_s4 + $0x50] sm:$0xff] (!%p1984_p5), %v1762_v22 }
 0x331   : > { %v1795_v0 = vmax.f32 %v1765_v14, 0.0  ;;  %v2223_v3 = vpop.f32.mrb[72].mxu0  ;;  %1831 = vst [vmem:[%s3070_s4 + $0x58] sm:$0xff] (!%p1984_p5), %v1765_v14 }
 0x332   : > { %v2224_v28 = vpop.f32.mrb[73].mxu0 }
 0x333   : > { %v1805_v29 = vpack.c.bf16 %v1795_v0, %v1794_v24  ;;  %v2225_v35 = vadd.f32 %v2224_v28, %v2223_v3  ;;  %v2226_v33 = vpop.f32.mrb[74].mxu0 }
 0x334   : > { %v2227_v5 = vpop.f32.mrb[75].mxu0 }
 0x335   : > { %1813 = vst [vmem:[#allocation2 + $0x28] sm:$0xff] %v1805_v29  ;;  %v1770_v16 = vadd.f32 %v2225_v35, %v2983_v54  ;;  %v2228_v17 = vadd.f32 %v2227_v5, %v2226_v33 }
 0x337   : > { %v1773_v53 = vadd.f32 %v2228_v17, %v1676_v27  ;;  %v1796_v34 = vmax.f32 %v1770_v16, 0.0  ;;  %1832 = vst [vmem:[%s3070_s4 + $0x60] sm:$0xff] (!%p1984_p5), %v1770_v16 }
 0x339   : > { %v1797_v31 = vmax.f32 %v1773_v53, 0.0  ;;  %v2229_v62 = vpop.f32.mrb[76].mxu0  ;;  %1833 = vst [vmem:[%s3070_s4 + $0x68] sm:$0xff] (!%p1984_p5), %v1773_v53 }
 0x33a   : > { %v2230_v37 = vpop.f32.mrb[77].mxu0 }
 0x33b   : > { %v1806_v23 = vpack.c.bf16 %v1797_v31, %v1796_v34  ;;  %v2231_v9 = vadd.f32 %v2230_v37, %v2229_v62  ;;  %v2232_v44 = vpop.f32.mrb[78].mxu0 }
 0x33c   : > { %v2233_v46 = vpop.f32.mrb[79].mxu0 }
 0x33d   : > { %1814 = vst [vmem:[#allocation2 + $0x30] sm:$0xff] %v1806_v23  ;;  %v1778_v32 = vadd.f32 %v2231_v9, %v1681_v38  ;;  %v2234_v1 = vadd.f32 %v2233_v46, %v2232_v44 }
 0x33f   : > { %v1781_v6 = vadd.f32 %v2234_v1, %v1684_v56  ;;  %v1798_v19 = vmax.f32 %v1778_v32, 0.0  ;;  %1819 = sbr.rel (%p1984_p5) target bundleno = 838 (0x346), region = 44  ;;  %1834 = vst [vmem:[%s3070_s4 + $0x70] sm:$0xff] (!%p1984_p5), %v1778_v32 }
 0x341   : > { %v1799_v10 = vmax.f32 %v1781_v6, 0.0  ;;  %1835 = vst [vmem:[%s3070_s4 + $0x78] sm:$0xff] (!%p1984_p5), %v1781_v6 }
 0x343   : > { %v1807_v30 = vpack.c.bf16 %v1799_v10, %v1798_v19 }
 0x345   : > { %1815 = vst [vmem:[#allocation2 + $0x38] sm:$0xff] %v1807_v30 }
 0x346 PF: > { %s14_s15 = sadd.s32 1, %s2473_s15  }
 0x347   : > { %p11_p6 = scmp.ge.s32.totalorder %s14_s15, 5  }
 0x349   :  { %13 = sbr.rel (!%p11_p6) target bundleno = 1 (0x1), region = 74 }

</bundles_post_ra>
